<compile_context>
chip_gen: v5e
topology: v5e:2x2
jax: 0.10.0
libtpu: 0.0.40
codegen_flags: <defaults>
</compile_context>

<pallas_src>
import jax
import jax.numpy as jnp
from jax.experimental import pallas as pl
from jax.experimental.pallas import tpu as pltpu


def _upsample_kernel(x0_ref, x1_ref, wcs_ref, bcc_ref, e_ref, kc_ref, bup_ref, o_ref):
    # x0_ref : (1, Co, th*W)    low-res input block (deconv branch), flat lanes
    # x1_ref : (1, Ci, th*4W)   high-res input block (conv branch), flat lanes
    # wcs_ref: (Co, Ci)         1x1 conv weight with BN scale folded in
    # bcc_ref: (Co, 1)          conv-branch folded BN bias
    # e_ref  : (th*W, th*4W)    0/1 block-diagonal nearest-upsample expansion
    # kc_ref : (Co, th*4W)      per-output-lane deconv coeff * BN scale
    # bup_ref: (Co, 1)          deconv-branch folded BN bias
    # o_ref  : (1, Co, th*4W)
    x1 = x1_ref[0]                                                        # (Ci, L)
    x0 = x0_ref[0]                                                        # (Co, L0)

    # conv branch: ReLU(BN(1x1 conv)) -- one lane-dense MXU matmul over channels.
    y = jnp.dot(wcs_ref[...], x1, preferred_element_type=jnp.float32) + bcc_ref[...]
    y = jnp.maximum(y, 0.0)

    # deconv branch: ReLU(BN(depthwise 2x2 stride-2 transposed conv)) --
    # 0/1 expansion matmul (one nonzero per column) + per-channel VPU epilogue.
    xe = jnp.dot(x0, e_ref[...], preferred_element_type=jnp.float32)     # (Co, L)
    up = jnp.maximum(xe * kc_ref[...] + bup_ref[...], 0.0)

    o_ref[0] = (up + y).astype(o_ref.dtype)                # single full-block store


def _pick_block_rows(H, W, Ci, Co, act_itemsize, out_itemsize, step_budget_bytes):
    """Largest legal block (in low-res rows) whose per-step traffic fits the budget."""
    S = 4 * W

    def step_bytes(th):
        return th * (Co * W * act_itemsize + Ci * S * act_itemsize + Co * S * out_itemsize)

    if step_bytes(H) <= step_budget_bytes:
        return H                                  # one block per batch element
    best = H                                      # full extent is always layout-legal
    for th in range(H - 1, 0, -1):
        # lane dims (th*W and th*4W) must be multiples of 128 unless full extent
        if H % th == 0 and (th * W) % 128 == 0 and step_bytes(th) <= step_budget_bytes:
            best = th
            break
    return best


def upsample_forward(x0, x1, kd, up_scale, up_bias, wconv, conv_scale, conv_bias,
                     *, block_rows=None, act_dtype=jnp.float32,
                     out_dtype=jnp.float32, step_budget_bytes=8 * 1024 * 1024):
    """
    x0: (N, Co, H, W)       layers[0]  (depthwise transposed-conv branch)
    x1: (N, Ci, 2H, 2W)     layers[1]  (1x1-conv branch)
    kd: (Co, 2, 2)          depthwise ConvTranspose2d weight (groups=Co, bias=False)
    up_scale, up_bias:   (Co,) folded BN (gamma/sqrt(var+eps), beta - mean*scale), deconv branch
    wconv: (Co, Ci)         1x1 conv weight (bias=False)
    conv_scale, conv_bias: (Co,) folded BN, conv branch
    returns: (N, Co, 2H, 2W) in out_dtype
    """
    N, Co, H, W = x0.shape
    Nb, Ci, H2, W2 = x1.shape
    assert Nb == N and H2 == 2 * H and W2 == 2 * W
    S = 2 * W2                                            # 4W lanes per low-res row

    act_itemsize = jnp.dtype(act_dtype).itemsize
    out_itemsize = jnp.dtype(out_dtype).itemsize
    th = (_pick_block_rows(H, W, Ci, Co, act_itemsize, out_itemsize, step_budget_bytes)
          if block_rows is None else block_rows)
    assert H % th == 0 and (th == H or (th * W) % 128 == 0), (H, W, th)
    L0 = th * W                                           # low-res lanes per block
    L = th * S                                            # full-res lanes per block

    # ---- one-time constant folding (wrapper / XLA side, tiny arrays) ----
    q = jnp.arange(L)
    r = q // S              # low-res row within the block
    s = q % S               # position within the pair of full-res output rows
    i_idx = s // W2         # output-row parity within the 2x2 cell
    j_idx = s % 2           # output-column parity within the 2x2 cell
    w_idx = (s % W2) // 2   # source column in x0
    p_src = r * W + w_idx   # source lane in the flattened x0 block
    e_mat = (jnp.arange(L0)[:, None] == p_src[None, :]).astype(act_dtype)   # (L0, L)
    kprime = kd * up_scale[:, None, None]                                   # (Co, 2, 2)
    kc = kprime[:, i_idx, j_idx].astype(jnp.float32)                        # (Co, L)
    wcs = (wconv * conv_scale[:, None]).astype(act_dtype)                   # (Co, Ci)
    bcc = conv_bias.reshape(Co, 1).astype(jnp.float32)
    bup = up_bias.reshape(Co, 1).astype(jnp.float32)

    # free row-major metadata reshapes: no transposes, no data movement
    x0_v = x0.reshape(N, Co, H * W).astype(act_dtype)
    x1_v = x1.reshape(N, Ci, H * S).astype(act_dtype)

    # Scoped-VMEM budget: double-buffered data blocks + constants, with slack.
    block_bytes = (Co * L0 + Ci * L) * act_itemsize + Co * L * out_itemsize
    const_bytes = (L0 * L + Co * Ci) * act_itemsize + (Co * L + 2 * Co) * 4
    vmem_limit = int(min(48 * 1024 * 1024,
                         max(32 * 1024 * 1024,
                             2 * block_bytes + 2 * const_bytes + (4 << 20))))

    out = pl.pallas_call(
        _upsample_kernel,
        out_shape=jax.ShapeDtypeStruct((N, Co, H * S), out_dtype),
        grid_spec=pltpu.PrefetchScalarGridSpec(
            num_scalar_prefetch=0,
            grid=(N, H // th),
            in_specs=[
                pl.BlockSpec((1, Co, L0), lambda n, t: (n, 0, t)),
                pl.BlockSpec((1, Ci, L), lambda n, t: (n, 0, t)),
                pl.BlockSpec((Co, Ci), lambda n, t: (0, 0)),
                pl.BlockSpec((Co, 1), lambda n, t: (0, 0)),
                pl.BlockSpec((L0, L), lambda n, t: (0, 0)),
                pl.BlockSpec((Co, L), lambda n, t: (0, 0)),
                pl.BlockSpec((Co, 1), lambda n, t: (0, 0)),
            ],
            out_specs=pl.BlockSpec((1, Co, L), lambda n, t: (n, 0, t)),
        ),
        compiler_params=pltpu.CompilerParams(
            dimension_semantics=("parallel", "parallel"),
            vmem_limit_bytes=vmem_limit,
        ),
    )(x0_v, x1_v, wcs, bcc, e_mat, kc, bup)

    # free reshape back to NCHW at full resolution
    return out.reshape(N, Co, H2, W2)


def init_params(key, out_dim, channel, eps=1e-3):
    """Synthetic inference-mode parameters matching the PyTorch module's shapes."""
    ks = jax.random.split(key, 12)
    kd = 0.5 * jax.random.normal(ks[0], (out_dim, 2, 2), jnp.float32)
    wconv = jax.random.normal(ks[1], (out_dim, channel), jnp.float32) / jnp.sqrt(channel)
    # deconv-branch BatchNorm (running stats, eps=0.001)
    g_up = 1.0 + 0.1 * jax.random.normal(ks[2], (out_dim,), jnp.float32)
    b_up = 0.1 * jax.random.normal(ks[3], (out_dim,), jnp.float32)
    m_up = 0.1 * jax.random.normal(ks[4], (out_dim,), jnp.float32)
    v_up = jax.random.uniform(ks[5], (out_dim,), jnp.float32, minval=0.5, maxval=1.5)
    up_scale = g_up / jnp.sqrt(v_up + eps)
    up_bias = b_up - m_up * up_scale
    # conv-branch BatchNorm
    g_c = 1.0 + 0.1 * jax.random.normal(ks[6], (out_dim,), jnp.float32)
    b_c = 0.1 * jax.random.normal(ks[7], (out_dim,), jnp.float32)
    m_c = 0.1 * jax.random.normal(ks[8], (out_dim,), jnp.float32)
    v_c = jax.random.uniform(ks[9], (out_dim,), jnp.float32, minval=0.5, maxval=1.5)
    conv_scale = g_c / jnp.sqrt(v_c + eps)
    conv_bias = b_c - m_c * conv_scale
    return kd, up_scale, up_bias, wconv, conv_scale, conv_bias


def reference_forward(x0, x1, kd, up_scale, up_bias, wconv, conv_scale, conv_bias):
    N, Co, H, W = x0.shape
    up = x0[:, :, :, None, :, None] * kd[None, :, None, :, None, :]      # (N,Co,H,2,W,2)
    up = up.reshape(N, Co, 2 * H, 2 * W)
    up = jnp.maximum(up * up_scale[None, :, None, None] + up_bias[None, :, None, None], 0.0)
    y = jnp.einsum('oc,nchw->nohw', wconv, x1, precision=jax.lax.Precision.HIGHEST)
    y = jnp.maximum(y * conv_scale[None, :, None, None] + conv_bias[None, :, None, None], 0.0)
    return up + y


if __name__ == "__main__":
    key = jax.random.PRNGKey(0)
    k_x0, k_x1, k_p = jax.random.split(key, 3)

    # Small shapes consistent with the module: layers[0] is the deeper (low-res) feature.
    N, out_dim, channel, H, W = 2, 24, 32, 16, 16
    x0 = jax.random.normal(k_x0, (N, out_dim, H, W), jnp.float32)            # layers[0]
    x1 = jax.random.normal(k_x1, (N, channel, 2 * H, 2 * W), jnp.float32)    # layers[1]

    params = init_params(k_p, out_dim, channel)
    ref = reference_forward(x0, x1, *params)

    # f32 activations: faithful to the PyTorch inference math.  MXU default precision
    # vs the HIGHEST-precision reference stays within 1e-3 at Ci=32 (tolerance is a
    # deliberate choice; pass precision=HIGHEST in the matmuls if tighter is needed).
    out = upsample_forward(x0, x1, *params)
    jax.block_until_ready(out)
    assert out.shape == (N, out_dim, 2 * H, 2 * W)
    err = float(jnp.max(jnp.abs(out - ref)))
    assert jnp.allclose(out, ref, atol=1e-3, rtol=1e-3), f"f32 max abs err {err}"

    # bf16 activations/weights (f32 accumulate + f32 epilogue): ~halves HBM traffic for
    # this bandwidth-bound kernel; checked against the f32 reference with a loose bound.
    out_bf16 = upsample_forward(x0, x1, *params, act_dtype=jnp.bfloat16)
    jax.block_until_ready(out_bf16)
    err_bf16 = float(jnp.max(jnp.abs(out_bf16 - ref)))
    assert err_bf16 < 0.15, f"bf16 max abs err {err_bf16}"

    print("KERNEL_OK")
</pallas_src>

<mosaic_0001>
module attributes {stable_mosaic.version = 11 : i64} {
  func.func @_upsample_kernel(%arg0: i32, %arg1: i32, %arg2: memref<1x24x256xf32, #tpu.memory_space<vmem>>, %arg3: memref<1x32x1024xf32, #tpu.memory_space<vmem>>, %arg4: memref<24x32xf32, #tpu.memory_space<vmem>>, %arg5: memref<24x1xf32, #tpu.memory_space<vmem>>, %arg6: memref<256x1024xf32, #tpu.memory_space<vmem>>, %arg7: memref<24x1024xf32, #tpu.memory_space<vmem>>, %arg8: memref<24x1xf32, #tpu.memory_space<vmem>>, %arg9: memref<1x24x1024xf32, #tpu.memory_space<vmem>>) attributes {dimension_semantics = [#tpu.dimension_semantics<parallel>, #tpu.dimension_semantics<parallel>], iteration_bounds = array<i64: 2, 1>, scalar_prefetch = 0 : i64, scratch_operands = 0 : i64, tpu.core_type = #tpu.core_type<tc>, window_params = [{transform_indices = @transform_0, window_bounds = array<i64: 1, 24, 256>}, {transform_indices = @transform_1, window_bounds = array<i64: 1, 32, 1024>}, {pipeline_mode = #tpu.pipeline_mode<synchronous>, transform_indices = @transform_2, window_bounds = array<i64: 24, 32>}, {pipeline_mode = #tpu.pipeline_mode<synchronous>, transform_indices = @transform_3, window_bounds = array<i64: 24, 1>}, {pipeline_mode = #tpu.pipeline_mode<synchronous>, transform_indices = @transform_4, window_bounds = array<i64: 256, 1024>}, {pipeline_mode = #tpu.pipeline_mode<synchronous>, transform_indices = @transform_5, window_bounds = array<i64: 24, 1024>}, {pipeline_mode = #tpu.pipeline_mode<synchronous>, transform_indices = @transform_6, window_bounds = array<i64: 24, 1>}, {transform_indices = @transform_7, window_bounds = array<i64: 1, 24, 1024>}]} {
    %c0 = arith.constant 0 : index
    %c0_0 = arith.constant 0 : index
    %c0_1 = arith.constant 0 : index
    %0 = vector.load %arg3[%c0, %c0_0, %c0_1] : memref<1x32x1024xf32, #tpu.memory_space<vmem>>, vector<1x32x1024xf32>
    %1 = vector.shape_cast %0 : vector<1x32x1024xf32> to vector<32x1024xf32>
    %c0_2 = arith.constant 0 : index
    %c0_3 = arith.constant 0 : index
    %c0_4 = arith.constant 0 : index
    %2 = vector.load %arg2[%c0_2, %c0_3, %c0_4] : memref<1x24x256xf32, #tpu.memory_space<vmem>>, vector<1x24x256xf32>
    %3 = vector.shape_cast %2 : vector<1x24x256xf32> to vector<24x256xf32>
    %c0_5 = arith.constant 0 : index
    %c0_6 = arith.constant 0 : index
    %4 = vector.load %arg4[%c0_5, %c0_6] : memref<24x32xf32, #tpu.memory_space<vmem>>, vector<24x32xf32>
    %cst = arith.constant dense<0.000000e+00> : vector<24x1024xf32>
    %5 = tpu.matmul %4, %1, %cst {dimension_numbers = #tpu.dot_dimension_numbers<[1], [0], [0], [1], [0, 0, 1, 1], [], []>} : vector<24x32xf32>, vector<32x1024xf32>, vector<24x1024xf32> -> vector<24x1024xf32>
    %c0_7 = arith.constant 0 : index
    %c0_8 = arith.constant 0 : index
    %6 = vector.load %arg5[%c0_7, %c0_8] : memref<24x1xf32, #tpu.memory_space<vmem>>, vector<24x1xf32>
    %7 = vector.broadcast %6 : vector<24x1xf32> to vector<24x1024xf32>
    %8 = arith.addf %5, %7 : vector<24x1024xf32>
    %cst_9 = arith.constant 0.000000e+00 : f32
    %9 = vector.broadcast %cst_9 : f32 to vector<24x1024xf32>
    %10 = arith.maximumf %8, %9 : vector<24x1024xf32>
    %c0_10 = arith.constant 0 : index
    %c0_11 = arith.constant 0 : index
    %11 = vector.load %arg6[%c0_10, %c0_11] : memref<256x1024xf32, #tpu.memory_space<vmem>>, vector<256x1024xf32>
    %cst_12 = arith.constant dense<0.000000e+00> : vector<24x1024xf32>
    %12 = tpu.matmul %3, %11, %cst_12 {dimension_numbers = #tpu.dot_dimension_numbers<[1], [0], [0], [1], [0, 0, 1, 1], [], []>} : vector<24x256xf32>, vector<256x1024xf32>, vector<24x1024xf32> -> vector<24x1024xf32>
    %c0_13 = arith.constant 0 : index
    %c0_14 = arith.constant 0 : index
    %13 = vector.load %arg7[%c0_13, %c0_14] : memref<24x1024xf32, #tpu.memory_space<vmem>>, vector<24x1024xf32>
    %14 = arith.mulf %12, %13 : vector<24x1024xf32>
    %c0_15 = arith.constant 0 : index
    %c0_16 = arith.constant 0 : index
    %15 = vector.load %arg8[%c0_15, %c0_16] : memref<24x1xf32, #tpu.memory_space<vmem>>, vector<24x1xf32>
    %16 = vector.broadcast %15 : vector<24x1xf32> to vector<24x1024xf32>
    %17 = arith.addf %14, %16 : vector<24x1024xf32>
    %cst_17 = arith.constant 0.000000e+00 : f32
    %18 = vector.broadcast %cst_17 : f32 to vector<24x1024xf32>
    %19 = arith.maximumf %17, %18 : vector<24x1024xf32>
    %20 = arith.addf %19, %10 : vector<24x1024xf32>
    %c0_18 = arith.constant 0 : index
    %c0_19 = arith.constant 0 : index
    %c0_20 = arith.constant 0 : index
    %21 = vector.load %arg9[%c0_18, %c0_19, %c0_20] : memref<1x24x1024xf32, #tpu.memory_space<vmem>>, vector<1x24x1024xf32>
    %22 = vector.shape_cast %21 : vector<1x24x1024xf32> to vector<24x1024xf32>
    %23 = vector.shape_cast %20 : vector<24x1024xf32> to vector<1x24x1024xf32>
    tpu.vector_store %arg9[%c0_18, %c0_19, %c0_20], %23 {strides = array<i32>} : memref<1x24x1024xf32, #tpu.memory_space<vmem>>, vector<1x24x1024xf32>,
    return
  }
  func.func @transform_0(%arg0: i32, %arg1: i32) -> (i32, i32, i32) {
    %c0_i32 = arith.constant 0 : i32
    %c0_i32_0 = arith.constant 0 : i32
    return %arg0, %c0_i32, %arg1 : i32, i32, i32
  }
  func.func @transform_1(%arg0: i32, %arg1: i32) -> (i32, i32, i32) {
    %c0_i32 = arith.constant 0 : i32
    %c0_i32_0 = arith.constant 0 : i32
    return %arg0, %c0_i32, %arg1 : i32, i32, i32
  }
  func.func @transform_2(%arg0: i32, %arg1: i32) -> (i32, i32) {
    %c0_i32 = arith.constant 0 : i32
    %c0_i32_0 = arith.constant 0 : i32
    %c0_i32_1 = arith.constant 0 : i32
    return %c0_i32, %c0_i32_0 : i32, i32
  }
  func.func @transform_3(%arg0: i32, %arg1: i32) -> (i32, i32) {
    %c0_i32 = arith.constant 0 : i32
    %c0_i32_0 = arith.constant 0 : i32
    %c0_i32_1 = arith.constant 0 : i32
    return %c0_i32, %c0_i32_0 : i32, i32
  }
  func.func @transform_4(%arg0: i32, %arg1: i32) -> (i32, i32) {
    %c0_i32 = arith.constant 0 : i32
    %c0_i32_0 = arith.constant 0 : i32
    %c0_i32_1 = arith.constant 0 : i32
    return %c0_i32, %c0_i32_0 : i32, i32
  }
  func.func @transform_5(%arg0: i32, %arg1: i32) -> (i32, i32) {
    %c0_i32 = arith.constant 0 : i32
    %c0_i32_0 = arith.constant 0 : i32
    %c0_i32_1 = arith.constant 0 : i32
    return %c0_i32, %c0_i32_0 : i32, i32
  }
  func.func @transform_6(%arg0: i32, %arg1: i32) -> (i32, i32) {
    %c0_i32 = arith.constant 0 : i32
    %c0_i32_0 = arith.constant 0 : i32
    %c0_i32_1 = arith.constant 0 : i32
    return %c0_i32, %c0_i32_0 : i32, i32
  }
  func.func @transform_7(%arg0: i32, %arg1: i32) -> (i32, i32, i32) {
    %c0_i32 = arith.constant 0 : i32
    %c0_i32_0 = arith.constant 0 : i32
    return %arg0, %c0_i32, %arg1 : i32, i32, i32
  }
}

</mosaic_0001>

<bundles_post_ra>
// kernel: tpu_custom_call.1
= control target key start
LH: loop header
LB: loop body
LE: loop exit
PB: predicated region body
PF: predicated region fallthrough
CT: control target
= control target key end

     0   :  { %s2614_s0 = inlined_call_operand.hbm [shape: f32[2,24,256], index: 0, kind: input, shape index: {}]   ;;  %s2615_s1 = inlined_call_operand.hbm [shape: f32[2,32,1024], index: 1, kind: input, shape index: {}]   ;;  %s2616_s2 = inlined_call_operand.vmem [shape: f32[24,32], index: 2, kind: input, shape index: {}]   ;;  %s2617_s3 = inlined_call_operand.vmem [shape: f32[24,1], index: 3, kind: input, shape index: {}]   ;;  %s2618_s4 = inlined_call_operand.hbm [shape: f32[256,1024], index: 4, kind: input, shape index: {}]   ;;  %s2619_s5 = inlined_call_operand.hbm [shape: f32[24,1024], index: 5, kind: input, shape index: {}]   ;;  %s2620_s6 = inlined_call_operand.vmem [shape: f32[24,1], index: 6, kind: input, shape index: {}]   ;;  %s2621_s7 = inlined_call_operand.hbm [shape: f32[2,24,1024], index: 7, kind: output, shape index: {}]  }
   0x1   :  { %2631 = sst [smem:[#allocation22_spill]] %s2618_s4 }
   0x2   :  { %2632 = sst [smem:[#allocation23_spill]] %s2619_s5 }
   0x3   :  { %2633 = sst [smem:[#allocation24_spill]] %s2621_s7 }
   0x4   :  { %12 = vsyncpa [#allocation3], 0 }
   0x5   :  { %14 = vsyncpa [#allocation3 + $0x1], 0 }
   0x6   :  { %15 = vsyncpa [#allocation6], 0 }
   0x7   :  { %17 = vsyncpa [#allocation6 + $0x1], 0 }
   0x8   :  { %18 = vsyncpa [#allocation9], 0 }
   0x9   :  { %19 = vsyncpa [#allocation4], 0 }
   0xa   :  { %21 = vsyncpa [#allocation4 + $0x1], 0  ;;  %s2094_s24 = smov 0   ;;  %s2096_s25 = smov 0  }
   0xb   :  { %s2098_s26 = smov 0   ;;  %s2100_s27 = smov 0  }
   0xc   :  { %s2102_s28 = smov 0   ;;  %s2104_s29 = smov 0  }
   0xd LB: > { %2634 = sst [smem:[#allocation16_spill]] %s2023_s24  ;;  %s2125_s30 = sadd.s32 4294967295, %s2043_s29   ;;  %s2043_s29 = sphi %s2104_s29, %s27_s29   ;;  %s2039_s28 = sphi %s2102_s28, %s2660_s28   ;;  %s2035_s27 = sphi %s2100_s27, %s2659_s27   ;;  %s2031_s26 = sphi %s2098_s26, %s2658_s26   ;;  %s2027_s25 = sphi %s2096_s25, %s2657_s25   ;;  %s2023_s24 = sphi %s2094_s24, %s2656_s24  }
   0xe   : > { %2635 = sst [smem:[#allocation17_spill]] %s2031_s26  ;;  %s1685_s8 = sadd.s32 4294967294, %s2043_s29  }
   0xf   : > { %p61_p0 = scmp.ne.s32.totalorder %s2027_s25, %s2023_s24  ;;  %p62_p1 = scmp.eq.s32.totalorder %s2125_s30, 0 }
  0x10   : > { %p220_p2 = scmp.eq.s32.totalorder %s2125_s30, 1  ;;  %p226_p3 = scmp.eq.s32.totalorder %s1685_s8, 1 }
  0x11   : > { %p2134_p4 = por %p62_p1, %p61_p0  ;;  %p1686_p5 = scmp.ge.s32.totalorder %s2043_s29, 1 }
  0x12   : > { %p2139_p6 = por %p226_p3, %p61_p0  ;;  %p233_p7 = scmp.lt.s32.totalorder %s2043_s29, 3 }
  0x13   : > { %s2639_s4 = sld [smem:[#allocation22_spill]]  ;;  %s2045_s15 = smov [#allocation7]  }
  0x14   : > { %s2637_s10 = scalar_select %p2139_p6, 1, 0 }
  0x15   : > { %p2147_p8 = pnand %p1686_p5, %p233_p7  ;;  %s252_s16 = sshll.u32 %s2045_s15, 4  ;;  %s253_s16 = int_to_ptr.vmem [resolvable:$true] %s252_s16 }
  0x16   : > { %2638 = sst [smem:[#allocation18_spill]] %s2637_s10  ;;  %p1689_p11 = scmp.ge.s32.totalorder %s2043_s29, 2 }
  0x17   : > { %p1745_p9 = pneg %p2147_p8  ;;  %s2641_s5 = sld [smem:[#allocation23_spill]] }
  0x18   : > { %s2622_s20 = smov 1024   ;;  %s2623_s21 = smov 64  }
  0x19   : > { %s250_s13 = sshll.u32 %s2639_s4, 4  ;;  %p1746_p10 = pnand %p1745_p9, %p62_p1  ;;  %s251_s13 = int_to_ptr.hbm [resolvable:$true] %s250_s13 }
  0x1a   : > { %s2048_s22 = smov [#allocation8]   ;;  %s39_s8 = sadd.s32 1, %s2039_s28 }
  0x1b   : > { %1748 = dma.hbm_to_vmem [thread:$0]  (!%p1746_p10), %s251_s13, 32768, %s253_s16, [#allocation6], %s2622_s20, %s2622_s20, %s2623_s21  }
  0x1c   : > { %s266_s23 = sshll.u32 %s2048_s22, 4  ;;  %s48_s11 = sadd.s32 1, %s2031_s26  ;;  %s267_s23 = int_to_ptr.vmem [resolvable:$true] %s266_s23 }
  0x1d   : > { %s264_s19 = sshll.u32 %s2641_s5, 4  ;;  %p41_p12 = scmp.ge.s32.totalorder %s39_s8, 2  ;;  %s265_s19 = int_to_ptr.hbm [resolvable:$true] %s264_s19 }
  0x1e   : > { %1751 = dma.hbm_to_vmem [thread:$0]  (!%p1746_p10), %s265_s19, 3072, %s267_s23, [#allocation9], %s2622_s20, %s2622_s20, %s2623_s21  }
  0x1f   : > { %p55_p13 = scmp.ne.s32.totalorder %s2031_s26, %s2027_s25  ;;  %p56_p0 = scmp.eq.s32.totalorder %s2043_s29, 0 }
  0x20   : > { %p1765_p3 = scmp.lt.s32.totalorder %s2043_s29, 2  ;;  %s2662_s8 = smov (%p41_p12, %s39_s8), 0 }
  0x21   : > { %2642 = sst [smem:[#allocation19_spill]] %s2662_s8  ;;  %p57_p5 = por %p56_p0, %p55_p13 }
  0x22   : > { %p2175_p7 = por %p220_p2, %p55_p13  ;;  %s43_s13 = ssub.s32 %s2039_s28, %s2662_s8 }
  0x23   : > { %s283_s15 = sand.u32 1, %s2031_s26   ;;  %p46_p9 = scmp.eq.s32.totalorder %s43_s13, 0 }
  0x24   : > { %s2643_s12 = scalar_select %p2175_p7, 1, 0 }
  0x25   : > { %s1726_s16 = smul.u32 48, %s283_s15  ;;  %p2182_p10 = pnand %p1765_p3, %p57_p5 }
  0x26   : > { %2644 = sst [smem:[#allocation20_spill]] %s2643_s12  ;;  %s1727_s19 = smul.u32 48, %s2039_s28 }
  0x27   : > { %s2187_s18 = scalar_select %p46_p9, %s2031_s26, %s48_s11  }
  0x28   : > { %s287_s22 = scalar_lea.vmem [#allocation2], %s1726_s16  ;;  %s294_s4 = scalar_lea.hbm %s2614_s0, %s1727_s19 }
  0x29   : > { %2646 = sst [smem:[#allocation21_spill]] %s2187_s18  ;;  %s297_s23 = sshll.u32 %s287_s22, 4  ;;  %s298_s23 = int_to_ptr.vmem [resolvable:$true] %s297_s23 }
  0x2a   : > { %s295_s5 = sshll.u32 %s294_s4, 4  ;;  %s284_s13 = scalar_lea.sflag [#allocation3], %s283_s15  ;;  %s296_s5 = int_to_ptr.hbm [resolvable:$true] %s295_s5 }
  0x2b   : > { %s2049_s8 = smov 256   ;;  %s2050_s10 = smov 16  }
  0x2c   : > { %1755 = dma.hbm_to_vmem [thread:$0]  (!%p2182_p10), %s296_s5, 768, %s298_s23, %s284_s13, %s2049_s8, %s2049_s8, %s2050_s10  }
  0x2d   : > { %s307_s24 = sand.u32 1, %s2043_s29   ;;  %s1691_s12 = sshll.u32 %s283_s15, 8 }
  0x2e   : > { %s1725_s11 = sshll.u32 %s2039_s28, 8  ;;  %s311_s18 = scalar_lea.vmem [#allocation5], %s1691_s12 }
  0x2f   : > { %s321_s26 = sshll.u32 %s311_s18, 4  ;;  %s318_s7 = scalar_lea.hbm %s2615_s1, %s1725_s11  ;;  %s322_s26 = int_to_ptr.vmem [resolvable:$true] %s321_s26 }
  0x30   : > { %s319_s20 = sshll.u32 %s318_s7, 4  ;;  %s308_s4 = scalar_lea.sflag [#allocation6], %s307_s24  ;;  %s320_s20 = int_to_ptr.hbm [resolvable:$true] %s319_s20 }
  0x31   : > { %s2647_s21 = smov 64   ;;  %s2648_s19 = smov 1024  }
  0x32   : > { %1758 = dma.hbm_to_vmem [thread:$0]  (!%p2182_p10), %s320_s20, 4096, %s322_s26, %s308_s4, %s2648_s19, %s2648_s19, %s2647_s21  }
  0x33   : > { %333 = sbr.rel (%p2147_p8) target bundleno = 407 (0x197), region = 48  ;;  %s2208_s5 = sand.u32 (!%p2147_p8), 1, %s2027_s25  }
  0x34   : > { %s1728_s10 = smul.u32 (!%p2147_p8), 48, %s2208_s5  ;;  %s336_s8 = scalar_lea.sflag (!%p2147_p8), [#allocation3], %s2208_s5 }
  0x36   : > { %s2212_s12 = scalar_lea.vmem (!%p2147_p8), [#allocation2], %s1728_s10 }
  0x38   : > { %2002 = dma.done.wait (%p2134_p4), %s336_s8, 768  }
  0x39   : > { %2004 = vsyncadd (%p2134_p4), %s336_s8, 4294966528  ;;  %s345_s7 = sand.u32 1, %s2125_s30   ;;  %s1695_s24 = sshll.u32 %s2208_s5, 8 }
  0x3a   : > { %s346_s26 = scalar_lea.sflag [#allocation6], %s345_s7  ;;  %s2220_s14 = scalar_lea.vmem [#allocation5], %s1695_s24 }
  0x3b   : > { %2006 = dma.done.wait (%p2134_p4), %s346_s26, 4096  }
  0x3c   : > { %2008 = vsyncadd (%p2134_p4), %s346_s26, 4294963200 }
  0x3d   : > { %2010 = dma.done.wait (%p62_p1), [#allocation6], 32768  }
  0x3e   : > { %2012 = vsyncadd (%p62_p1), [#allocation6], 4294934528 }
  0x3f   : > { %2014 = dma.done.wait (%p62_p1), [#allocation9], 3072  }
  0x40   : > { %2016 = vsyncadd (%p62_p1), [#allocation9], 4294964224  ;;  %v423_v0 = vld [vmem:[%s2220_s14 + $0xc0] sm:$0xff]  ;;  %v424_v1 = vld [vmem:[%s2220_s14 + $0xc8] sm:$0xff]  ;;  %vm458_vm0 = vcmask 261120   ;;  %s1729_s24 = smul.u32 192, %s2208_s5 }
  0x41   : > { %v425_v2 = vld [vmem:[%s2220_s14 + $0xd0] sm:$0xff]  ;;  %480 = vmatpush.msra.mxu0 %v423_v0  ;;  %506 = vmatpush.msra.mxu1 %v424_v1  ;;  %v426_v3 = vld [vmem:[%s2220_s14 + $0xd8] sm:$0xff]  ;;  %v415_v4 = vld [vmem:[%s2220_s14 + $0x80] sm:$0xff]  ;;  %s2649_s15 = sld [smem:[#allocation24_spill]]  ;;  %s1535_s13 = scalar_lea.sflag [#allocation4], %s2208_s5 }
  0x42   : > { %v416_v5 = vld [vmem:[%s2220_s14 + $0x88] sm:$0xff]  ;;  %532 = vmatpush.msra.mxu2 %v425_v2  ;;  %558 = vmatpush.msra.mxu3 %v426_v3  ;;  %v417_v6 = vld [vmem:[%s2220_s14 + $0x90] sm:$0xff]  ;;  %v418_v7 = vld [vmem:[%s2220_s14 + $0x98] sm:$0xff]  ;;  %s2488_s26 = scalar_lea.vmem [#allocation10], %s1729_s24 }
  0x43   : > { %v407_v8 = vld [vmem:[%s2220_s14 + $0x40] sm:$0xff]  ;;  %481 = vmatpush.msra.mxu0 %v415_v4  ;;  %507 = vmatpush.msra.mxu1 %v416_v5  ;;  %v408_v9 = vld [vmem:[%s2220_s14 + $0x48] sm:$0xff]  ;;  %v409_v10 = vld [vmem:[%s2220_s14 + $0x50] sm:$0xff]  ;;  %s1549_s18 = sshll.u32 %s2488_s26, 4  ;;  %s1550_s18 = int_to_ptr.vmem [resolvable:$true] %s1549_s18 }
  0x44   : > { %v410_v11 = vld [vmem:[%s2220_s14 + $0x58] sm:$0xff]  ;;  %533 = vmatpush.msra.mxu2 %v417_v6  ;;  %559 = vmatpush.msra.mxu3 %v418_v7  ;;  %v399_v12 = vld [vmem:[%s2220_s14] sm:$0xff]  ;;  %v400_v13 = vld [vmem:[%s2220_s14 + $0x8] sm:$0xff] }
  0x45   : > { %482 = vmatpush.msra.mxu0 %v407_v8  ;;  %508 = vmatpush.msra.mxu1 %v408_v9  ;;  %v401_v14 = vld [vmem:[%s2220_s14 + $0x10] sm:$0xff]  ;;  %v402_v15 = vld [vmem:[%s2220_s14 + $0x18] sm:$0xff]  ;;  %v2253_v16 = vld [vmem:[%s2616_s2] sm:$0xff]  ;;  %v2051_v8 = vmov 0  }
  0x46   : > { %534 = vmatpush.msra.mxu2 %v409_v10  ;;  %560 = vmatpush.msra.mxu3 %v410_v11  ;;  %v427_v17 = vld [vmem:[%s2220_s14 + $0xe0] sm:$0xff]  ;;  %v428_v18 = vld [vmem:[%s2220_s14 + $0xe8] sm:$0xff]  ;;  %v429_v19 = vld [vmem:[%s2220_s14 + $0xf0] sm:$0xff] }
  0x47   : > { %483 = vmatpush.msra.mxu0 %v399_v12  ;;  %509 = vmatpush.msra.mxu1 %v400_v13  ;;  %v430_v20 = vld [vmem:[%s2220_s14 + $0xf8] sm:$0xff]  ;;  %v419_v21 = vld [vmem:[%s2220_s14 + $0xa0] sm:$0xff]  ;;  %v420_v22 = vld [vmem:[%s2220_s14 + $0xa8] sm:$0xff]  ;;  %s1969_s4 = scalar_lea.hbm %s2649_s15, 384 }
  0x48   : > { %535 = vmatpush.msra.mxu2 %v401_v14  ;;  %561 = vmatpush.msra.mxu3 %v402_v15  ;;  %v421_v23 = vld [vmem:[%s2220_s14 + $0xb0] sm:$0xff]  ;;  %v422_v24 = vld [vmem:[%s2220_s14 + $0xb8] sm:$0xff]  ;;  %v411_v25 = vld [vmem:[%s2220_s14 + $0x60] sm:$0xff] }
  0x49   : > { %1698 = vmatmul.msk.f32.vlgmr.msra.gmra.mxu0 %vm458_vm0, %v2253_v16  ;;  %1701 = vmatmul.msk.f32.vlgmr.msra.gmra.mxu1 %vm458_vm0, %v2253_v16  ;;  %v412_v26 = vld [vmem:[%s2220_s14 + $0x68] sm:$0xff]  ;;  %v413_v27 = vld [vmem:[%s2220_s14 + $0x70] sm:$0xff]  ;;  %v414_v28 = vld [vmem:[%s2220_s14 + $0x78] sm:$0xff] }
  0x4a   : > { %1704 = vmatmul.msk.f32.vlgmr.msra.gmra.mxu2 %vm458_vm0, %v2253_v16  ;;  %1707 = vmatmul.msk.f32.vlgmr.msra.gmra.mxu3 %vm458_vm0, %v2253_v16  ;;  %v403_v29 = vld [vmem:[%s2220_s14 + $0x20] sm:$0xff]  ;;  %v404_v30 = vld [vmem:[%s2220_s14 + $0x28] sm:$0xff]  ;;  %v405_v31 = vld [vmem:[%s2220_s14 + $0x30] sm:$0xff] }
  0x4b   : > { %584 = vmatpush.msrb.mxu0 %v427_v17  ;;  %610 = vmatpush.msrb.mxu1 %v428_v18  ;;  %v406_v32 = vld [vmem:[%s2220_s14 + $0x38] sm:$0xff]  ;;  %v820_v33 = vld [vmem:[#allocation7 + $0x3c0] sm:$0xff]  ;;  %v821_v35 = vld [vmem:[#allocation7 + $0x3c8] sm:$0xff]  ;;  %s1730_s14 = smul.u32 192, %s2035_s27 }
  0x4c   : > { %636 = vmatpush.msrb.mxu2 %v429_v19  ;;  %662 = vmatpush.msrb.mxu3 %v430_v20  ;;  %v948_v34 = vld [vmem:[#allocation7 + $0x7c0] sm:$0xff]  ;;  %v949_v36 = vld [vmem:[#allocation7 + $0x7c8] sm:$0xff]  ;;  %v2295_v54 = vld [vmem:[%s2616_s2 + $0x10] sm:$0xff] }
  0x4d   : > { %585 = vmatpush.msrb.mxu0 %v419_v21  ;;  %611 = vmatpush.msrb.mxu1 %v420_v22  ;;  %v2282_v37 = vld [vmem:[%s2616_s2 + $0x8] sm:$0xff]  ;;  %v812_v38 = vld [vmem:[#allocation7 + $0x380] sm:$0xff]  ;;  %s1548_s17 = scalar_lea.hbm %s2649_s15, %s1730_s14 }
  0x4e   : > { %637 = vmatpush.msrb.mxu2 %v421_v23  ;;  %663 = vmatpush.msrb.mxu3 %v422_v24  ;;  %v940_v39 = vld [vmem:[#allocation7 + $0x780] sm:$0xff]  ;;  %v813_v40 = vld [vmem:[#allocation7 + $0x388] sm:$0xff]  ;;  %s1551_s23 = sshll.u32 %s1548_s17, 4  ;;  %s1552_s23 = int_to_ptr.hbm [resolvable:$true] %s1551_s23 }
  0x4f   : > { %586 = vmatpush.msrb.mxu0 %v411_v25  ;;  %612 = vmatpush.msrb.mxu1 %v412_v26  ;;  %v941_v41 = vld [vmem:[#allocation7 + $0x788] sm:$0xff]  ;;  %v804_v42 = vld [vmem:[#allocation7 + $0x340] sm:$0xff]  ;;  %s1963_s11 = sshra.s32 %s1552_s23, 4  ;;  %s1964_s11 = int_to_ptr.hbm [resolvable:$true] %s1963_s11 }
  0x50   : > { %638 = vmatpush.msrb.mxu2 %v413_v27  ;;  %664 = vmatpush.msrb.mxu3 %v414_v28  ;;  %v932_v43 = vld [vmem:[#allocation7 + $0x740] sm:$0xff]  ;;  %v805_v44 = vld [vmem:[#allocation7 + $0x348] sm:$0xff]  ;;  %s1965_s16 = scalar_lea.hbm %s1964_s11, 192  ;;  %p1970_p8 = scmp.lt.s32.totalorder %s1964_s11, %s2649_s15 }
  0x51   : > { %587 = vmatpush.msrb.mxu0 %v403_v29  ;;  %613 = vmatpush.msrb.mxu1 %v404_v30  ;;  %v933_v45 = vld [vmem:[#allocation7 + $0x748] sm:$0xff]  ;;  %v796_v46 = vld [vmem:[#allocation7 + $0x300] sm:$0xff]  ;;  %p1966_p1 = scmp.ne.s32.totalorder %s1964_s11, %s1965_s16  ;;  %p1971_p12 = scmp.lt.s32.totalorder %s1969_s4, %s1965_s16 }
  0x52   : > { %639 = vmatpush.msrb.mxu2 %v405_v31  ;;  %665 = vmatpush.msrb.mxu3 %v406_v32  ;;  %v924_v47 = vld [vmem:[#allocation7 + $0x700] sm:$0xff]  ;;  %v797_v48 = vld [vmem:[#allocation7 + $0x308] sm:$0xff] }
  0x53   : > { %956 = vmatpush.msra.mxu0 %v820_v33  ;;  %982 = vmatpush.msra.mxu1 %v948_v34  ;;  %v925_v49 = vld [vmem:[#allocation7 + $0x708] sm:$0xff]  ;;  %v788_v50 = vld [vmem:[#allocation7 + $0x2c0] sm:$0xff]  ;;  %p1967_p2 = pnand %p1966_p1, %p2175_p7  ;;  %p1972_p13 = por %p1971_p12, %p1970_p8 }
  0x54   : > { %1008 = vmatpush.msra.mxu2 %v821_v35  ;;  %1034 = vmatpush.msra.mxu3 %v949_v36  ;;  %v916_v51 = vld [vmem:[#allocation7 + $0x6c0] sm:$0xff]  ;;  %v789_v52 = vld [vmem:[#allocation7 + $0x2c8] sm:$0xff] }
  0x55   : > { %1699 = vmatmul.msk.f32.gmra.mxu0 %vm458_vm0, %v2282_v37  ;;  %1702 = vmatmul.msk.f32.gmra.mxu1 %vm458_vm0, %v2282_v37  ;;  %v917_v53 = vld [vmem:[#allocation7 + $0x6c8] sm:$0xff]  ;;  %v780_v55 = vld [vmem:[#allocation7 + $0x280] sm:$0xff]  ;;  %p1968_p4 = pneg %p1967_p2 }
  0x56   : > { %1705 = vmatmul.msk.f32.gmra.mxu2 %vm458_vm0, %v2282_v37  ;;  %1708 = vmatmul.msk.f32.gmra.mxu3 %vm458_vm0, %v2282_v37  ;;  %v908_v56 = vld [vmem:[#allocation7 + $0x680] sm:$0xff]  ;;  %v781_v57 = vld [vmem:[#allocation7 + $0x288] sm:$0xff] }
  0x57   : > { %957 = vmatpush.msra.mxu0 %v812_v38  ;;  %983 = vmatpush.msra.mxu1 %v940_v39  ;;  %v909_v58 = vld [vmem:[#allocation7 + $0x688] sm:$0xff]  ;;  %v772_v59 = vld [vmem:[#allocation7 + $0x240] sm:$0xff]  ;;  %v822_v38 = vld [vmem:[#allocation7 + $0x3d0] sm:$0xff]  ;;  %p1973_p0 = pnand %p1972_p13, %p1968_p4 }
  0x58   : > { %1009 = vmatpush.msra.mxu2 %v813_v40  ;;  %1035 = vmatpush.msra.mxu3 %v941_v41  ;;  %v900_v60 = vld [vmem:[#allocation7 + $0x640] sm:$0xff]  ;;  %v773_v61 = vld [vmem:[#allocation7 + $0x248] sm:$0xff]  ;;  %v950_v39 = vld [vmem:[#allocation7 + $0x7d0] sm:$0xff] }
  0x59   : > { %958 = vmatpush.msra.mxu0 %v804_v42  ;;  %984 = vmatpush.msra.mxu1 %v932_v43  ;;  %v901_v62 = vld [vmem:[#allocation7 + $0x648] sm:$0xff]  ;;  %v764_v63 = vld [vmem:[#allocation7 + $0x200] sm:$0xff]  ;;  %v823_v40 = vld [vmem:[#allocation7 + $0x3d8] sm:$0xff] }
  0x5a   : > { %1010 = vmatpush.msra.mxu2 %v805_v44  ;;  %1036 = vmatpush.msra.mxu3 %v933_v45  ;;  %v892_v0 = vld [vmem:[#allocation7 + $0x600] sm:$0xff]  ;;  %v765_v1 = vld [vmem:[#allocation7 + $0x208] sm:$0xff]  ;;  %v951_v41 = vld [vmem:[#allocation7 + $0x7d8] sm:$0xff] }
  0x5b   : > { %959 = vmatpush.msra.mxu0 %v796_v46  ;;  %985 = vmatpush.msra.mxu1 %v924_v47  ;;  %v893_v2 = vld [vmem:[#allocation7 + $0x608] sm:$0xff]  ;;  %v756_v3 = vld [vmem:[#allocation7 + $0x1c0] sm:$0xff]  ;;  %v814_v42 = vld [vmem:[#allocation7 + $0x390] sm:$0xff] }
  0x5c   : > { %1011 = vmatpush.msra.mxu2 %v797_v48  ;;  %1037 = vmatpush.msra.mxu3 %v925_v49  ;;  %v884_v4 = vld [vmem:[#allocation7 + $0x5c0] sm:$0xff]  ;;  %v757_v5 = vld [vmem:[#allocation7 + $0x1c8] sm:$0xff]  ;;  %v942_v43 = vld [vmem:[#allocation7 + $0x790] sm:$0xff] }
  0x5d   : > { %960 = vmatpush.msra.mxu0 %v788_v50  ;;  %986 = vmatpush.msra.mxu1 %v916_v51  ;;  %v885_v6 = vld [vmem:[#allocation7 + $0x5c8] sm:$0xff]  ;;  %v440_v7 = vld [vmem:[%s2617_s3] sm:$0xff]  ;;  %v815_v44 = vld [vmem:[#allocation7 + $0x398] sm:$0xff] }
  0x5e   : > { %1012 = vmatpush.msra.mxu2 %v789_v52  ;;  %1038 = vmatpush.msra.mxu3 %v917_v53  ;;  %v748_v9 = vld [vmem:[#allocation7 + $0x180] sm:$0xff]  ;;  %v749_v11 = vld [vmem:[#allocation7 + $0x188] sm:$0xff]  ;;  %v943_v45 = vld [vmem:[#allocation7 + $0x798] sm:$0xff] }
  0x5f   : > { %1700 = vmatmul.msk.f32.gmra.mxu0 %vm458_vm0, %v2295_v54  ;;  %1703 = vmatmul.msk.f32.gmra.mxu1 %vm458_vm0, %v2295_v54  ;;  %v876_v10 = vld [vmem:[#allocation7 + $0x580] sm:$0xff]  ;;  %v877_v12 = vld [vmem:[#allocation7 + $0x588] sm:$0xff]  ;;  %v806_v46 = vld [vmem:[#allocation7 + $0x350] sm:$0xff] }
  0x60   : > { %1706 = vmatmul.msk.f32.gmra.mxu2 %vm458_vm0, %v2295_v54  ;;  %1709 = vmatmul.msk.f32.gmra.mxu3 %vm458_vm0, %v2295_v54  ;;  %v740_v13 = vld [vmem:[#allocation7 + $0x140] sm:$0xff]  ;;  %v741_v15 = vld [vmem:[#allocation7 + $0x148] sm:$0xff]  ;;  %v934_v47 = vld [vmem:[#allocation7 + $0x750] sm:$0xff] }
  0x61   : > { %961 = vmatpush.msra.mxu0 %v780_v55  ;;  %987 = vmatpush.msra.mxu1 %v908_v56  ;;  %v868_v14 = vld [vmem:[#allocation7 + $0x540] sm:$0xff]  ;;  %v869_v17 = vld [vmem:[#allocation7 + $0x548] sm:$0xff]  ;;  %v807_v48 = vld [vmem:[#allocation7 + $0x358] sm:$0xff] }
  0x62   : > { %1013 = vmatpush.msra.mxu2 %v781_v57  ;;  %1039 = vmatpush.msra.mxu3 %v909_v58  ;;  %v732_v18 = vld [vmem:[#allocation7 + $0x100] sm:$0xff]  ;;  %v733_v20 = vld [vmem:[#allocation7 + $0x108] sm:$0xff]  ;;  %v935_v49 = vld [vmem:[#allocation7 + $0x758] sm:$0xff] }
  0x63   : > { %962 = vmatpush.msra.mxu0 %v772_v59  ;;  %988 = vmatpush.msra.mxu1 %v900_v60  ;;  %v860_v19 = vld [vmem:[#allocation7 + $0x500] sm:$0xff]  ;;  %v861_v21 = vld [vmem:[#allocation7 + $0x508] sm:$0xff]  ;;  %v442_v50 = vld [vmem:[%s2617_s3 + $0x10] sm:$0xff] }
  0x64   : > { %1014 = vmatpush.msra.mxu2 %v773_v61  ;;  %1040 = vmatpush.msra.mxu3 %v901_v62  ;;  %v724_v22 = vld [vmem:[#allocation7 + $0xc0] sm:$0xff]  ;;  %v853_v24 = vld [vmem:[#allocation7 + $0x4c8] sm:$0xff]  ;;  %v798_v51 = vld [vmem:[#allocation7 + $0x310] sm:$0xff] }
  0x65   : > { %963 = vmatpush.msra.mxu0 %v764_v63  ;;  %989 = vmatpush.msra.mxu1 %v892_v0  ;;  %v852_v23 = vld [vmem:[#allocation7 + $0x4c0] sm:$0xff]  ;;  %v717_v27 = vld [vmem:[#allocation7 + $0x88] sm:$0xff]  ;;  %v926_v52 = vld [vmem:[#allocation7 + $0x710] sm:$0xff] }
  0x66   : > { %1015 = vmatpush.msra.mxu2 %v765_v1  ;;  %1041 = vmatpush.msra.mxu3 %v893_v2  ;;  %v716_v25 = vld [vmem:[#allocation7 + $0x80] sm:$0xff]  ;;  %v845_v28 = vld [vmem:[#allocation7 + $0x488] sm:$0xff]  ;;  %v799_v53 = vld [vmem:[#allocation7 + $0x318] sm:$0xff] }
  0x67   : > { %1826 = vset.pattern.permute.xlu0 %v2051_v8  ;;  %964 = vmatpush.msra.mxu0 %v756_v3  ;;  %v844_v26 = vld [vmem:[#allocation7 + $0x480] sm:$0xff]  ;;  %v709_v31 = vld [vmem:[#allocation7 + $0x48] sm:$0xff]  ;;  %v790_v55 = vld [vmem:[#allocation7 + $0x2d0] sm:$0xff] }
  0x68   : > { %990 = vmatpush.msra.mxu1 %v884_v4  ;;  %1016 = vmatpush.msra.mxu2 %v757_v5  ;;  %v708_v29 = vld [vmem:[#allocation7 + $0x40] sm:$0xff]  ;;  %v837_v32 = vld [vmem:[#allocation7 + $0x448] sm:$0xff]  ;;  %v918_v56 = vld [vmem:[#allocation7 + $0x6d0] sm:$0xff] }
  0x69   : > { %1042 = vmatpush.msra.mxu3 %v885_v6  ;;  %445 = vperm.xlu0 %1826, %v440_v7   ;;  %v836_v30 = vld [vmem:[#allocation7 + $0x440] sm:$0xff]  ;;  %v441_v33 = vld [vmem:[%s2617_s3 + $0x8] sm:$0xff]  ;;  %v791_v57 = vld [vmem:[#allocation7 + $0x2d8] sm:$0xff] }
  0x6a   : > { %1710 = vmatmul.msk.f32.vlgmr.msrb.gmra.mxu0 %vm458_vm0, %v2253_v16  ;;  %1713 = vmatmul.msk.f32.vlgmr.msrb.gmra.mxu1 %vm458_vm0, %v2253_v16  ;;  %v700_v34 = vld [vmem:[#allocation7] sm:$0xff]  ;;  %v701_v36 = vld [vmem:[#allocation7 + $0x8] sm:$0xff]  ;;  %v919_v58 = vld [vmem:[#allocation7 + $0x6d8] sm:$0xff] }
  0x6b   : > { %1716 = vmatmul.msk.f32.vlgmr.msrb.gmra.mxu2 %vm458_vm0, %v2253_v16  ;;  %1719 = vmatmul.msk.f32.vlgmr.msrb.gmra.mxu3 %vm458_vm0, %v2253_v16  ;;  %v725_v16 = vld [vmem:[#allocation7 + $0xc8] sm:$0xff]  ;;  %v828_v35 = vld [vmem:[#allocation7 + $0x400] sm:$0xff]  ;;  %v782_v61 = vld [vmem:[#allocation7 + $0x290] sm:$0xff] }
  0x6c   : > { %965 = vmatpush.msra.mxu0 %v748_v9  ;;  %991 = vmatpush.msra.mxu1 %v876_v10  ;;  %v2341_v59 = vld [vmem:[%s2212_s12] sm:$0xff]  ;;  %v2344_v60 = vld [vmem:[%s2212_s12 + $0x8] sm:$0xff] }
  0x6d   : > { %1017 = vmatpush.msra.mxu2 %v749_v11  ;;  %1043 = vmatpush.msra.mxu3 %v877_v12  ;;  %v910_v62 = vld [vmem:[#allocation7 + $0x690] sm:$0xff]  ;;  %v783_v63 = vld [vmem:[#allocation7 + $0x298] sm:$0xff] }
  0x6e   : > { %966 = vmatpush.msra.mxu0 %v740_v13  ;;  %992 = vmatpush.msra.mxu1 %v868_v14  ;;  %v911_v0 = vld [vmem:[#allocation7 + $0x698] sm:$0xff]  ;;  %v774_v1 = vld [vmem:[#allocation7 + $0x250] sm:$0xff] }
  0x6f   : > { %1018 = vmatpush.msra.mxu2 %v741_v15  ;;  %1044 = vmatpush.msra.mxu3 %v869_v17  ;;  %v902_v2 = vld [vmem:[#allocation7 + $0x650] sm:$0xff]  ;;  %v775_v3 = vld [vmem:[#allocation7 + $0x258] sm:$0xff] }
  0x70   : > { %967 = vmatpush.msra.mxu0 %v732_v18  ;;  %993 = vmatpush.msra.mxu1 %v860_v19  ;;  %v903_v4 = vld [vmem:[#allocation7 + $0x658] sm:$0xff]  ;;  %v766_v5 = vld [vmem:[#allocation7 + $0x210] sm:$0xff] }
  0x71   : > { %1019 = vmatpush.msra.mxu2 %v733_v20  ;;  %1045 = vmatpush.msra.mxu3 %v861_v21  ;;  %v894_v6 = vld [vmem:[#allocation7 + $0x610] sm:$0xff]  ;;  %v767_v7 = vld [vmem:[#allocation7 + $0x218] sm:$0xff] }
  0x72   : > { %968 = vmatpush.msra.mxu0 %v724_v22  ;;  %994 = vmatpush.msra.mxu1 %v852_v23  ;;  %v895_v9 = vld [vmem:[#allocation7 + $0x618] sm:$0xff]  ;;  %v758_v10 = vld [vmem:[#allocation7 + $0x1d0] sm:$0xff] }
  0x73   : > { %1020 = vmatpush.msra.mxu2 %v725_v16  ;;  %1046 = vmatpush.msra.mxu3 %v853_v24  ;;  %v886_v11 = vld [vmem:[#allocation7 + $0x5d0] sm:$0xff]  ;;  %v759_v12 = vld [vmem:[#allocation7 + $0x1d8] sm:$0xff] }
  0x74   : > { %1711 = vmatmul.msk.f32.gmra.mxu0 %vm458_vm0, %v2282_v37  ;;  %1714 = vmatmul.msk.f32.gmra.mxu1 %vm458_vm0, %v2282_v37  ;;  %v887_v13 = vld [vmem:[#allocation7 + $0x5d8] sm:$0xff]  ;;  %v2351_v14 = vld [vmem:[%s2212_s12 + $0x10] sm:$0xff] }
  0x75   : > { %1717 = vmatmul.msk.f32.gmra.mxu2 %vm458_vm0, %v2282_v37  ;;  %1720 = vmatmul.msk.f32.gmra.mxu3 %vm458_vm0, %v2282_v37  ;;  %v829_v37 = vld [vmem:[#allocation7 + $0x408] sm:$0xff]  ;;  %v750_v17 = vld [vmem:[#allocation7 + $0x190] sm:$0xff]  ;;  %v751_v19 = vld [vmem:[#allocation7 + $0x198] sm:$0xff] }
  0x76   : > { %969 = vmatpush.msra.mxu0 %v716_v25  ;;  %995 = vmatpush.msra.mxu1 %v844_v26  ;;  %v2354_v15 = vld [vmem:[%s2212_s12 + $0x18] sm:$0xff]  ;;  %v878_v18 = vld [vmem:[#allocation7 + $0x590] sm:$0xff] }
  0x77   : > { %1021 = vmatpush.msra.mxu2 %v717_v27  ;;  %1047 = vmatpush.msra.mxu3 %v845_v28  ;;  %v879_v20 = vld [vmem:[#allocation7 + $0x598] sm:$0xff]  ;;  %v742_v21 = vld [vmem:[#allocation7 + $0x150] sm:$0xff] }
  0x78   : > { %970 = vmatpush.msra.mxu0 %v708_v29  ;;  %996 = vmatpush.msra.mxu1 %v836_v30  ;;  %v870_v22 = vld [vmem:[#allocation7 + $0x550] sm:$0xff]  ;;  %v743_v23 = vld [vmem:[#allocation7 + $0x158] sm:$0xff] }
  0x79   : > { %1022 = vmatpush.msra.mxu2 %v709_v31  ;;  %1048 = vmatpush.msra.mxu3 %v837_v32  ;;  %v871_v16 = vld [vmem:[#allocation7 + $0x558] sm:$0xff]  ;;  %v734_v24 = vld [vmem:[#allocation7 + $0x110] sm:$0xff]  ;;  %v1420_v32 = vld [vmem:[%s2620_s6] sm:$0xff] }
  0x7a   : > { %450 = vperm.xlu0 %1826, %v441_v33   ;;  %971 = vmatpush.msra.mxu0 %v700_v34  ;;  %v862_v25 = vld [vmem:[#allocation7 + $0x510] sm:$0xff]  ;;  %v735_v26 = vld [vmem:[#allocation7 + $0x118] sm:$0xff] }
  0x7b   : > { %997 = vmatpush.msra.mxu1 %v828_v35  ;;  %1023 = vmatpush.msra.mxu2 %v701_v36  ;;  %v863_v27 = vld [vmem:[#allocation7 + $0x518] sm:$0xff]  ;;  %v726_v28 = vld [vmem:[#allocation7 + $0xd0] sm:$0xff] }
  0x7c   : > { %1049 = vmatpush.msra.mxu3 %v829_v37  ;;  %1060 = vmatpush.msrb.mxu0 %v822_v38  ;;  %v854_v29 = vld [vmem:[#allocation7 + $0x4d0] sm:$0xff]  ;;  %v727_v30 = vld [vmem:[#allocation7 + $0xd8] sm:$0xff] }
  0x7d   : > { %1086 = vmatpush.msrb.mxu1 %v950_v39  ;;  %1112 = vmatpush.msrb.mxu2 %v823_v40  ;;  %v855_v31 = vld [vmem:[#allocation7 + $0x4d8] sm:$0xff]  ;;  %v2364_v33 = vld [vmem:[%s2212_s12 + $0x20] sm:$0xff] }
  0x7e   : > { %1138 = vmatpush.msrb.mxu3 %v951_v41  ;;  %1712 = vmatmul.msk.f32.gmra.mxu0 %vm458_vm0, %v2295_v54  ;;  %v2367_v34 = vld [vmem:[%s2212_s12 + $0x28] sm:$0xff]  ;;  %v718_v35 = vld [vmem:[#allocation7 + $0x90] sm:$0xff] }
  0x7f   : > { %1715 = vmatmul.msk.f32.gmra.mxu1 %vm458_vm0, %v2295_v54  ;;  %1718 = vmatmul.msk.f32.gmra.mxu2 %vm458_vm0, %v2295_v54  ;;  %v846_v36 = vld [vmem:[#allocation7 + $0x490] sm:$0xff]  ;;  %v719_v37 = vld [vmem:[#allocation7 + $0x98] sm:$0xff] }
  0x80   : > { %1721 = vmatmul.msk.f32.gmra.mxu3 %vm458_vm0, %v2295_v54  ;;  %1061 = vmatpush.msrb.mxu0 %v814_v42  ;;  %v927_v54 = vld [vmem:[#allocation7 + $0x718] sm:$0xff]  ;;  %v710_v39 = vld [vmem:[#allocation7 + $0x50] sm:$0xff] }
  0x81   : > { %1087 = vmatpush.msrb.mxu1 %v942_v43  ;;  %1113 = vmatpush.msrb.mxu2 %v815_v44  ;;  %v847_v38 = vld [vmem:[#allocation7 + $0x498] sm:$0xff]  ;;  %v838_v40 = vld [vmem:[#allocation7 + $0x450] sm:$0xff] }
  0x82   : > { %1139 = vmatpush.msrb.mxu3 %v943_v45  ;;  %1062 = vmatpush.msrb.mxu0 %v806_v46  ;;  %v711_v41 = vld [vmem:[#allocation7 + $0x58] sm:$0xff]  ;;  %v702_v43 = vld [vmem:[#allocation7 + $0x10] sm:$0xff] }
  0x83   : > { %1088 = vmatpush.msrb.mxu1 %v934_v47  ;;  %1114 = vmatpush.msrb.mxu2 %v807_v48  ;;  %v839_v42 = vld [vmem:[#allocation7 + $0x458] sm:$0xff]  ;;  %v830_v44 = vld [vmem:[#allocation7 + $0x410] sm:$0xff]  ;;  %v824_v47 = vld [vmem:[#allocation7 + $0x3e0] sm:$0xff] }
  0x84   : > { %1140 = vmatpush.msrb.mxu3 %v935_v49  ;;  %1827 = vset.pattern.permute.xlu1 %v2051_v8  ;;  %v703_v45 = vld [vmem:[#allocation7 + $0x18] sm:$0xff]  ;;  %v952_v48 = vld [vmem:[#allocation7 + $0x7e0] sm:$0xff]  ;;  %v825_v49 = vld [vmem:[#allocation7 + $0x3e8] sm:$0xff] }
  0x85   : > { %455 = vperm.xlu1 %1827, %v442_v50   ;;  %1063 = vmatpush.msrb.mxu0 %v798_v51  ;;  %v831_v46 = vld [vmem:[#allocation7 + $0x418] sm:$0xff]  ;;  %v953_v50 = vld [vmem:[#allocation7 + $0x7e8] sm:$0xff]  ;;  %v816_v51 = vld [vmem:[#allocation7 + $0x3a0] sm:$0xff] }
  0x86   : > { %1089 = vmatpush.msrb.mxu1 %v926_v52  ;;  %1115 = vmatpush.msrb.mxu2 %v799_v53  ;;  %v944_v52 = vld [vmem:[#allocation7 + $0x7a0] sm:$0xff]  ;;  %v817_v53 = vld [vmem:[#allocation7 + $0x3a8] sm:$0xff] }
  0x87   : > { %1141 = vmatpush.msrb.mxu3 %v927_v54  ;;  %1064 = vmatpush.msrb.mxu0 %v790_v55  ;;  %v945_v54 = vld [vmem:[#allocation7 + $0x7a8] sm:$0xff]  ;;  %v808_v55 = vld [vmem:[#allocation7 + $0x360] sm:$0xff] }
  0x88   : > { %1090 = vmatpush.msrb.mxu1 %v918_v56  ;;  %1116 = vmatpush.msrb.mxu2 %v791_v57  ;;  %v936_v56 = vld [vmem:[#allocation7 + $0x760] sm:$0xff]  ;;  %v809_v57 = vld [vmem:[#allocation7 + $0x368] sm:$0xff] }
  0x89   : > { %1142 = vmatpush.msrb.mxu3 %v919_v58  ;;  %972 = vmatmul.f32.vlgmr.msra.gmra.mxu0 %v2341_v59  ;;  %v937_v58 = vld [vmem:[#allocation7 + $0x768] sm:$0xff] }
  0x8a   : > { %998 = vmatmul.f32.vlgmr.msra.gmra.mxu1 %v2344_v60  ;;  %1024 = vmatmul.f32.vlgmr.msra.gmra.mxu2 %v2341_v59 }
  0x8b   : > { %1050 = vmatmul.f32.vlgmr.msra.gmra.mxu3 %v2344_v60  ;;  %1065 = vmatpush.msrb.mxu0 %v782_v61  ;;  %v800_v61 = vld [vmem:[#allocation7 + $0x320] sm:$0xff] }
  0x8c   : > { %1091 = vmatpush.msrb.mxu1 %v910_v62  ;;  %1117 = vmatpush.msrb.mxu2 %v783_v63  ;;  %v928_v62 = vld [vmem:[#allocation7 + $0x720] sm:$0xff]  ;;  %v801_v63 = vld [vmem:[#allocation7 + $0x328] sm:$0xff] }
  0x8d   : > { %1143 = vmatpush.msrb.mxu3 %v911_v0  ;;  %1066 = vmatpush.msrb.mxu0 %v774_v1  ;;  %v929_v0 = vld [vmem:[#allocation7 + $0x728] sm:$0xff]  ;;  %v792_v1 = vld [vmem:[#allocation7 + $0x2e0] sm:$0xff] }
  0x8e   : > { %1092 = vmatpush.msrb.mxu1 %v902_v2  ;;  %1118 = vmatpush.msrb.mxu2 %v775_v3  ;;  %v920_v2 = vld [vmem:[#allocation7 + $0x6e0] sm:$0xff]  ;;  %v793_v3 = vld [vmem:[#allocation7 + $0x2e8] sm:$0xff] }
  0x8f   : > { %1144 = vmatpush.msrb.mxu3 %v903_v4  ;;  %1067 = vmatpush.msrb.mxu0 %v766_v5  ;;  %v921_v4 = vld [vmem:[#allocation7 + $0x6e8] sm:$0xff]  ;;  %v784_v5 = vld [vmem:[#allocation7 + $0x2a0] sm:$0xff] }
  0x90   : > { %1093 = vmatpush.msrb.mxu1 %v894_v6  ;;  %1119 = vmatpush.msrb.mxu2 %v767_v7  ;;  %v912_v6 = vld [vmem:[#allocation7 + $0x6a0] sm:$0xff]  ;;  %v785_v7 = vld [vmem:[#allocation7 + $0x2a8] sm:$0xff] }
  0x91   : > { %1145 = vmatpush.msrb.mxu3 %v895_v9  ;;  %1068 = vmatpush.msrb.mxu0 %v758_v10  ;;  %v913_v9 = vld [vmem:[#allocation7 + $0x6a8] sm:$0xff]  ;;  %v776_v10 = vld [vmem:[#allocation7 + $0x260] sm:$0xff] }
  0x92   : > { %1094 = vmatpush.msrb.mxu1 %v886_v11  ;;  %1120 = vmatpush.msrb.mxu2 %v759_v12  ;;  %v904_v11 = vld [vmem:[#allocation7 + $0x660] sm:$0xff]  ;;  %v777_v12 = vld [vmem:[#allocation7 + $0x268] sm:$0xff] }
  0x93   : > { %1146 = vmatpush.msrb.mxu3 %v887_v13  ;;  %975 = vmatmul.f32.gmra.mxu0 %v2351_v14  ;;  %v905_v13 = vld [vmem:[#allocation7 + $0x668] sm:$0xff] }
  0x94   : > { %1001 = vmatmul.f32.gmra.mxu1 %v2354_v15  ;;  %1027 = vmatmul.f32.gmra.mxu2 %v2351_v14 }
  0x95   : > { %1053 = vmatmul.f32.gmra.mxu3 %v2354_v15  ;;  %1069 = vmatpush.msrb.mxu0 %v750_v17  ;;  %v768_v17 = vld [vmem:[#allocation7 + $0x220] sm:$0xff] }
  0x96   : > { %1095 = vmatpush.msrb.mxu1 %v878_v18  ;;  %1121 = vmatpush.msrb.mxu2 %v751_v19  ;;  %v896_v18 = vld [vmem:[#allocation7 + $0x620] sm:$0xff]  ;;  %v769_v19 = vld [vmem:[#allocation7 + $0x228] sm:$0xff] }
  0x97   : > { %1147 = vmatpush.msrb.mxu3 %v879_v20  ;;  %1070 = vmatpush.msrb.mxu0 %v742_v21  ;;  %v897_v20 = vld [vmem:[#allocation7 + $0x628] sm:$0xff]  ;;  %v760_v21 = vld [vmem:[#allocation7 + $0x1e0] sm:$0xff] }
  0x98   : > { %1096 = vmatpush.msrb.mxu1 %v870_v22  ;;  %1122 = vmatpush.msrb.mxu2 %v743_v23  ;;  %v888_v22 = vld [vmem:[#allocation7 + $0x5e0] sm:$0xff]  ;;  %v761_v23 = vld [vmem:[#allocation7 + $0x1e8] sm:$0xff] }
  0x99   : > { %1148 = vmatpush.msrb.mxu3 %v871_v16  ;;  %1071 = vmatpush.msrb.mxu0 %v734_v24  ;;  %v889_v16 = vld [vmem:[#allocation7 + $0x5e8] sm:$0xff]  ;;  %v752_v24 = vld [vmem:[#allocation7 + $0x1a0] sm:$0xff] }
  0x9a   : > { %1097 = vmatpush.msrb.mxu1 %v862_v25  ;;  %1123 = vmatpush.msrb.mxu2 %v735_v26  ;;  %v880_v25 = vld [vmem:[#allocation7 + $0x5a0] sm:$0xff]  ;;  %v753_v26 = vld [vmem:[#allocation7 + $0x1a8] sm:$0xff] }
  0x9b   : > { %1149 = vmatpush.msrb.mxu3 %v863_v27  ;;  %1072 = vmatpush.msrb.mxu0 %v726_v28  ;;  %v881_v27 = vld [vmem:[#allocation7 + $0x5a8] sm:$0xff]  ;;  %v744_v28 = vld [vmem:[#allocation7 + $0x160] sm:$0xff] }
  0x9c   : > { %1098 = vmatpush.msrb.mxu1 %v854_v29  ;;  %1124 = vmatpush.msrb.mxu2 %v727_v30  ;;  %v872_v29 = vld [vmem:[#allocation7 + $0x560] sm:$0xff]  ;;  %v745_v30 = vld [vmem:[#allocation7 + $0x168] sm:$0xff] }
  0x9d   : > { %1150 = vmatpush.msrb.mxu3 %v855_v31  ;;  %1425 = vperm.xlu1 %1827, %v1420_v32   ;;  %v873_v31 = vld [vmem:[#allocation7 + $0x568] sm:$0xff]  ;;  %v736_v32 = vld [vmem:[#allocation7 + $0x120] sm:$0xff] }
  0x9e   : > { %978 = vmatmul.f32.gmra.mxu0 %v2364_v33  ;;  %1004 = vmatmul.f32.gmra.mxu1 %v2367_v34 }
  0x9f   : > { %1030 = vmatmul.f32.gmra.mxu2 %v2364_v33  ;;  %1056 = vmatmul.f32.gmra.mxu3 %v2367_v34 }
  0xa0   : > { %1073 = vmatpush.msrb.mxu0 %v718_v35  ;;  %1099 = vmatpush.msrb.mxu1 %v846_v36  ;;  %v864_v35 = vld [vmem:[#allocation7 + $0x520] sm:$0xff]  ;;  %v737_v36 = vld [vmem:[#allocation7 + $0x128] sm:$0xff] }
  0xa1   : > { %1125 = vmatpush.msrb.mxu2 %v719_v37  ;;  %1151 = vmatpush.msrb.mxu3 %v847_v38  ;;  %v865_v37 = vld [vmem:[#allocation7 + $0x528] sm:$0xff]  ;;  %v728_v38 = vld [vmem:[#allocation7 + $0xe0] sm:$0xff] }
  0xa2   : > { %1074 = vmatpush.msrb.mxu0 %v710_v39  ;;  %1100 = vmatpush.msrb.mxu1 %v838_v40  ;;  %v856_v39 = vld [vmem:[#allocation7 + $0x4e0] sm:$0xff]  ;;  %v729_v40 = vld [vmem:[#allocation7 + $0xe8] sm:$0xff] }
  0xa3   : > { %1126 = vmatpush.msrb.mxu2 %v711_v41  ;;  %1152 = vmatpush.msrb.mxu3 %v839_v42  ;;  %v857_v41 = vld [vmem:[#allocation7 + $0x4e8] sm:$0xff]  ;;  %v720_v42 = vld [vmem:[#allocation7 + $0xa0] sm:$0xff] }
  0xa4   : > { %1075 = vmatpush.msrb.mxu0 %v702_v43  ;;  %1101 = vmatpush.msrb.mxu1 %v830_v44  ;;  %v1421_v43 = vld [vmem:[%s2620_s6 + $0x8] sm:$0xff]  ;;  %v848_v44 = vld [vmem:[#allocation7 + $0x4a0] sm:$0xff] }
  0xa5   : > { %1127 = vmatpush.msrb.mxu2 %v703_v45  ;;  %1153 = vmatpush.msrb.mxu3 %v831_v46  ;;  %v721_v45 = vld [vmem:[#allocation7 + $0xa8] sm:$0xff] }
  0xa6   : > { %1164 = vmatpush.msra.mxu0 %v824_v47  ;;  %1190 = vmatpush.msra.mxu1 %v952_v48  ;;  %v849_v46 = vld [vmem:[#allocation7 + $0x4a8] sm:$0xff]  ;;  %v712_v47 = vld [vmem:[#allocation7 + $0x60] sm:$0xff] }
  0xa7   : > { %1216 = vmatpush.msra.mxu2 %v825_v49  ;;  %1242 = vmatpush.msra.mxu3 %v953_v50  ;;  %v840_v48 = vld [vmem:[#allocation7 + $0x460] sm:$0xff]  ;;  %v713_v49 = vld [vmem:[#allocation7 + $0x68] sm:$0xff] }
  0xa8   : > { %1165 = vmatpush.msra.mxu0 %v816_v51  ;;  %1191 = vmatpush.msra.mxu1 %v944_v52  ;;  %v841_v50 = vld [vmem:[#allocation7 + $0x468] sm:$0xff]  ;;  %v704_v51 = vld [vmem:[#allocation7 + $0x20] sm:$0xff] }
  0xa9   : > { %1217 = vmatpush.msra.mxu2 %v817_v53  ;;  %1243 = vmatpush.msra.mxu3 %v945_v54  ;;  %v832_v52 = vld [vmem:[#allocation7 + $0x420] sm:$0xff]  ;;  %v705_v53 = vld [vmem:[#allocation7 + $0x28] sm:$0xff] }
  0xaa   : > { %1076 = vmatmul.f32.vlgmr.msrb.gmra.mxu0 %v2341_v59  ;;  %1102 = vmatmul.f32.vlgmr.msrb.gmra.mxu1 %v2344_v60  ;;  %v833_v54 = vld [vmem:[#allocation7 + $0x428] sm:$0xff] }
  0xab   : > { %1128 = vmatmul.f32.vlgmr.msrb.gmra.mxu2 %v2341_v59  ;;  %1154 = vmatmul.f32.vlgmr.msrb.gmra.mxu3 %v2344_v60 }
  0xac   : > { %1166 = vmatpush.msra.mxu0 %v808_v55  ;;  %1192 = vmatpush.msra.mxu1 %v936_v56  ;;  %v954_v55 = vld [vmem:[#allocation7 + $0x7f0] sm:$0xff]  ;;  %v827_v56 = vld [vmem:[#allocation7 + $0x3f8] sm:$0xff] }
  0xad   : > { %1218 = vmatpush.msra.mxu2 %v809_v57  ;;  %1244 = vmatpush.msra.mxu3 %v937_v58  ;;  %v955_v57 = vld [vmem:[#allocation7 + $0x7f8] sm:$0xff] }
  0xae   : > { %1167 = vmatpush.msra.mxu0 %v800_v61  ;;  %1193 = vmatpush.msra.mxu1 %v928_v62  ;;  %v818_v62 = vld [vmem:[#allocation7 + $0x3b0] sm:$0xff] }
  0xaf   : > { %1219 = vmatpush.msra.mxu2 %v801_v63  ;;  %1245 = vmatpush.msra.mxu3 %v929_v0  ;;  %v946_v63 = vld [vmem:[#allocation7 + $0x7b0] sm:$0xff]  ;;  %v819_v0 = vld [vmem:[#allocation7 + $0x3b8] sm:$0xff] }
  0xb0   : > { %1168 = vmatpush.msra.mxu0 %v792_v1  ;;  %1194 = vmatpush.msra.mxu1 %v920_v2  ;;  %v947_v1 = vld [vmem:[#allocation7 + $0x7b8] sm:$0xff]  ;;  %v1422_v2 = vld [vmem:[%s2620_s6 + $0x10] sm:$0xff] }
  0xb1   : > { %1220 = vmatpush.msra.mxu2 %v793_v3  ;;  %1246 = vmatpush.msra.mxu3 %v921_v4  ;;  %v810_v3 = vld [vmem:[#allocation7 + $0x370] sm:$0xff] }
  0xb2   : > { %1169 = vmatpush.msra.mxu0 %v784_v5  ;;  %1195 = vmatpush.msra.mxu1 %v912_v6  ;;  %v938_v4 = vld [vmem:[#allocation7 + $0x770] sm:$0xff]  ;;  %v811_v5 = vld [vmem:[#allocation7 + $0x378] sm:$0xff] }
  0xb3   : > { %1221 = vmatpush.msra.mxu2 %v785_v7  ;;  %1247 = vmatpush.msra.mxu3 %v913_v9  ;;  %v939_v6 = vld [vmem:[#allocation7 + $0x778] sm:$0xff]  ;;  %v802_v7 = vld [vmem:[#allocation7 + $0x330] sm:$0xff] }
  0xb4   : > { %1079 = vmatmul.f32.gmra.mxu0 %v2351_v14  ;;  %1105 = vmatmul.f32.gmra.mxu1 %v2354_v15  ;;  %v930_v9 = vld [vmem:[#allocation7 + $0x730] sm:$0xff] }
  0xb5   : > { %1131 = vmatmul.f32.gmra.mxu2 %v2351_v14  ;;  %1157 = vmatmul.f32.gmra.mxu3 %v2354_v15 }
  0xb6   : > { %1170 = vmatpush.msra.mxu0 %v776_v10  ;;  %1196 = vmatpush.msra.mxu1 %v904_v11  ;;  %v803_v10 = vld [vmem:[#allocation7 + $0x338] sm:$0xff] }
  0xb7   : > { %1222 = vmatpush.msra.mxu2 %v777_v12  ;;  %1248 = vmatpush.msra.mxu3 %v905_v13  ;;  %v931_v13 = vld [vmem:[#allocation7 + $0x738] sm:$0xff] }
  0xb8   : > { %1171 = vmatpush.msra.mxu0 %v768_v17  ;;  %1197 = vmatpush.msra.mxu1 %v896_v18 }
  0xb9   : > { %1223 = vmatpush.msra.mxu2 %v769_v19  ;;  %1249 = vmatpush.msra.mxu3 %v897_v20  ;;  %v794_v19 = vld [vmem:[#allocation7 + $0x2f0] sm:$0xff] }
  0xba   : > { %1172 = vmatpush.msra.mxu0 %v760_v21  ;;  %1198 = vmatpush.msra.mxu1 %v888_v22  ;;  %v922_v20 = vld [vmem:[#allocation7 + $0x6f0] sm:$0xff]  ;;  %v795_v21 = vld [vmem:[#allocation7 + $0x2f8] sm:$0xff] }
  0xbb   : > { %1224 = vmatpush.msra.mxu2 %v761_v23  ;;  %1250 = vmatpush.msra.mxu3 %v889_v16  ;;  %v923_v22 = vld [vmem:[#allocation7 + $0x6f8] sm:$0xff]  ;;  %v786_v23 = vld [vmem:[#allocation7 + $0x2b0] sm:$0xff] }
  0xbc   : > { %1173 = vmatpush.msra.mxu0 %v752_v24  ;;  %1199 = vmatpush.msra.mxu1 %v880_v25  ;;  %v914_v16 = vld [vmem:[#allocation7 + $0x6b0] sm:$0xff]  ;;  %v787_v24 = vld [vmem:[#allocation7 + $0x2b8] sm:$0xff] }
  0xbd   : > { %1225 = vmatpush.msra.mxu2 %v753_v26  ;;  %1251 = vmatpush.msra.mxu3 %v881_v27  ;;  %v915_v25 = vld [vmem:[#allocation7 + $0x6b8] sm:$0xff]  ;;  %v778_v26 = vld [vmem:[#allocation7 + $0x270] sm:$0xff] }
  0xbe   : > { %1082 = vmatmul.f32.gmra.mxu0 %v2364_v33  ;;  %1108 = vmatmul.f32.gmra.mxu1 %v2367_v34  ;;  %v906_v27 = vld [vmem:[#allocation7 + $0x670] sm:$0xff] }
  0xbf   : > { %1134 = vmatmul.f32.gmra.mxu2 %v2364_v33  ;;  %1160 = vmatmul.f32.gmra.mxu3 %v2367_v34 }
  0xc0   : > { %1174 = vmatpush.msra.mxu0 %v744_v28  ;;  %1200 = vmatpush.msra.mxu1 %v872_v29  ;;  %v779_v28 = vld [vmem:[#allocation7 + $0x278] sm:$0xff] }
  0xc1   : > { %1226 = vmatpush.msra.mxu2 %v745_v30  ;;  %1252 = vmatpush.msra.mxu3 %v873_v31  ;;  %v907_v30 = vld [vmem:[#allocation7 + $0x678] sm:$0xff]  ;;  %v770_v31 = vld [vmem:[#allocation7 + $0x230] sm:$0xff] }
  0xc2   : > { %1175 = vmatpush.msra.mxu0 %v736_v32  ;;  %1201 = vmatpush.msra.mxu1 %v864_v35  ;;  %v898_v35 = vld [vmem:[#allocation7 + $0x630] sm:$0xff] }
  0xc3   : > { %1227 = vmatpush.msra.mxu2 %v737_v36  ;;  %1253 = vmatpush.msra.mxu3 %v865_v37  ;;  %v771_v36 = vld [vmem:[#allocation7 + $0x238] sm:$0xff] }
  0xc4   : > { %1176 = vmatpush.msra.mxu0 %v728_v38  ;;  %1202 = vmatpush.msra.mxu1 %v856_v39  ;;  %v899_v39 = vld [vmem:[#allocation7 + $0x638] sm:$0xff] }
  0xc5   : > { %1228 = vmatpush.msra.mxu2 %v729_v40  ;;  %1254 = vmatpush.msra.mxu3 %v857_v41  ;;  %v762_v40 = vld [vmem:[#allocation7 + $0x1f0] sm:$0xff] }
  0xc6   : > { %1828 = vset.pattern.permute.xlu2 %v2051_v8  ;;  %1177 = vmatpush.msra.mxu0 %v720_v42  ;;  %v826_v8 = vld [vmem:[#allocation7 + $0x3f0] sm:$0xff]  ;;  %v2391_v58 = vpop.f32.mrf.mxu0  ;;  %v2393_v61 = vpop.f32.mrf.mxu1  ;;  %v763_v42 = vld [vmem:[#allocation7 + $0x1f8] sm:$0xff] }
  0xc7   : > { %1430 = vperm.xlu2 %1828, %v1421_v43   ;;  %1203 = vmatpush.msra.mxu1 %v848_v44  ;;  %v890_v41 = vld [vmem:[#allocation7 + $0x5f0] sm:$0xff]  ;;  %v891_v43 = vld [vmem:[#allocation7 + $0x5f8] sm:$0xff] }
  0xc8   : > { %1229 = vmatpush.msra.mxu2 %v721_v45  ;;  %1255 = vmatpush.msra.mxu3 %v849_v46  ;;  %v754_v44 = vld [vmem:[#allocation7 + $0x1b0] sm:$0xff]  ;;  %v755_v46 = vld [vmem:[#allocation7 + $0x1b8] sm:$0xff] }
  0xc9   : > { %1178 = vmatpush.msra.mxu0 %v712_v47  ;;  %1204 = vmatpush.msra.mxu1 %v840_v48  ;;  %v882_v45 = vld [vmem:[#allocation7 + $0x5b0] sm:$0xff]  ;;  %v883_v47 = vld [vmem:[#allocation7 + $0x5b8] sm:$0xff] }
  0xca   : > { %1230 = vmatpush.msra.mxu2 %v713_v49  ;;  %1256 = vmatpush.msra.mxu3 %v841_v50  ;;  %v746_v48 = vld [vmem:[#allocation7 + $0x170] sm:$0xff] }
  0xcb   : > { %1179 = vmatpush.msra.mxu0 %v704_v51  ;;  %1205 = vmatpush.msra.mxu1 %v832_v52  ;;  %v874_v51 = vld [vmem:[#allocation7 + $0x570] sm:$0xff]  ;;  %v747_v52 = vld [vmem:[#allocation7 + $0x178] sm:$0xff] }
  0xcc   : > { %1231 = vmatpush.msra.mxu2 %v705_v53  ;;  %1257 = vmatpush.msra.mxu3 %v833_v54  ;;  %v875_v53 = vld [vmem:[#allocation7 + $0x578] sm:$0xff]  ;;  %v738_v54 = vld [vmem:[#allocation7 + $0x130] sm:$0xff] }
  0xcd   : > { %1180 = vmatmul.f32.vlgmr.msra.gmra.mxu0 %v2341_v59  ;;  %1206 = vmatmul.f32.vlgmr.msra.gmra.mxu1 %v2344_v60  ;;  %v2400_v11 = vpop.f32.mrf.mxu2  ;;  %v2402_v12 = vpop.f32.mrf.mxu3 }
  0xce   : > { %1232 = vmatmul.f32.vlgmr.msra.gmra.mxu2 %v2341_v59  ;;  %1258 = vmatmul.f32.vlgmr.msra.gmra.mxu3 %v2344_v60 }
  0xcf   : > { %1268 = vmatpush.msrb.mxu0 %v826_v8  ;;  %1294 = vmatpush.msrb.mxu1 %v954_v55  ;;  %v866_v55 = vld [vmem:[#allocation7 + $0x530] sm:$0xff] }
  0xd0   : > { %1320 = vmatpush.msrb.mxu2 %v827_v56  ;;  %1346 = vmatpush.msrb.mxu3 %v955_v57  ;;  %v739_v56 = vld [vmem:[#allocation7 + $0x138] sm:$0xff] }
  0xd1   : > { %1269 = vmatpush.msrb.mxu0 %v818_v62  ;;  %1295 = vmatpush.msrb.mxu1 %v946_v63  ;;  %v867_v63 = vld [vmem:[#allocation7 + $0x538] sm:$0xff] }
  0xd2   : > { %1321 = vmatpush.msrb.mxu2 %v819_v0  ;;  %1347 = vmatpush.msrb.mxu3 %v947_v1  ;;  %v2404_v17 = vpop.f32.mrf.mxu0  ;;  %v2406_v18 = vpop.f32.mrf.mxu1  ;;  %v730_v0 = vld [vmem:[#allocation7 + $0xf0] sm:$0xff] }
  0xd3   : > { %1435 = vperm.xlu2 %1828, %v1422_v2   ;;  %1270 = vmatpush.msrb.mxu0 %v810_v3  ;;  %v858_v2 = vld [vmem:[#allocation7 + $0x4f0] sm:$0xff]  ;;  %v731_v3 = vld [vmem:[#allocation7 + $0xf8] sm:$0xff] }
  0xd4   : > { %1296 = vmatpush.msrb.mxu1 %v938_v4  ;;  %1322 = vmatpush.msrb.mxu2 %v811_v5  ;;  %v859_v4 = vld [vmem:[#allocation7 + $0x4f8] sm:$0xff]  ;;  %v722_v5 = vld [vmem:[#allocation7 + $0xb0] sm:$0xff] }
  0xd5   : > { %1348 = vmatpush.msrb.mxu3 %v939_v6  ;;  %1271 = vmatpush.msrb.mxu0 %v802_v7  ;;  %v850_v6 = vld [vmem:[#allocation7 + $0x4b0] sm:$0xff]  ;;  %v723_v7 = vld [vmem:[#allocation7 + $0xb8] sm:$0xff] }
  0xd6   : > { %1297 = vmatpush.msrb.mxu1 %v930_v9  ;;  %1323 = vmatpush.msrb.mxu2 %v803_v10  ;;  %v851_v9 = vld [vmem:[#allocation7 + $0x4b8] sm:$0xff]  ;;  %v714_v10 = vld [vmem:[#allocation7 + $0x70] sm:$0xff] }
  0xd7   : > { %1349 = vmatpush.msrb.mxu3 %v931_v13  ;;  %1183 = vmatmul.f32.gmra.mxu0 %v2351_v14  ;;  %v842_v13 = vld [vmem:[#allocation7 + $0x470] sm:$0xff] }
  0xd8   : > { %1209 = vmatmul.f32.gmra.mxu1 %v2354_v15  ;;  %1235 = vmatmul.f32.gmra.mxu2 %v2351_v14 }
  0xd9   : > { %1261 = vmatmul.f32.gmra.mxu3 %v2354_v15  ;;  %1272 = vmatpush.msrb.mxu0 %v794_v19  ;;  %v2412_v29 = vpop.f32.mrf.mxu2  ;;  %v2414_v32 = vpop.f32.mrf.mxu3  ;;  %v715_v19 = vld [vmem:[#allocation7 + $0x78] sm:$0xff] }
  0xda   : > { %1298 = vmatpush.msrb.mxu1 %v922_v20  ;;  %1324 = vmatpush.msrb.mxu2 %v795_v21  ;;  %v843_v20 = vld [vmem:[#allocation7 + $0x478] sm:$0xff]  ;;  %v706_v21 = vld [vmem:[#allocation7 + $0x30] sm:$0xff] }
  0xdb   : > { %1350 = vmatpush.msrb.mxu3 %v923_v22  ;;  %1273 = vmatpush.msrb.mxu0 %v786_v23  ;;  %v2428_v8 = vpop.permute.xlu0 %445 }
  0xdc   : > { %1299 = vmatpush.msrb.mxu1 %v914_v16  ;;  %1325 = vmatpush.msrb.mxu2 %v787_v24  ;;  %v2416_v37 = vpop.f32.mrf.mxu0  ;;  %v2418_v38 = vpop.f32.mrf.mxu1  ;;  %v834_v16 = vld [vmem:[#allocation7 + $0x430] sm:$0xff]  ;;  %v707_v24 = vld [vmem:[#allocation7 + $0x38] sm:$0xff] }
  0xdd   : > { %1351 = vmatpush.msrb.mxu3 %v915_v25  ;;  %1274 = vmatpush.msrb.mxu0 %v778_v26 }
  0xde   : > { %1300 = vmatpush.msrb.mxu1 %v906_v27  ;;  %1326 = vmatpush.msrb.mxu2 %v779_v28  ;;  %v835_v27 = vld [vmem:[#allocation7 + $0x438] sm:$0xff] }
  0xdf   : > { %1352 = vmatpush.msrb.mxu3 %v907_v30  ;;  %1275 = vmatpush.msrb.mxu0 %v770_v31 }
  0xe0   : > { %1301 = vmatpush.msrb.mxu1 %v898_v35  ;;  %1327 = vmatpush.msrb.mxu2 %v771_v36 }
  0xe1   : > { %1353 = vmatpush.msrb.mxu3 %v899_v39  ;;  %1186 = vmatmul.f32.gmra.mxu0 %v2364_v33 }
  0xe2   : > { %1212 = vmatmul.f32.gmra.mxu1 %v2367_v34  ;;  %1238 = vmatmul.f32.gmra.mxu2 %v2364_v33 }
  0xe3   : > { %1264 = vmatmul.f32.gmra.mxu3 %v2367_v34  ;;  %1276 = vmatpush.msrb.mxu0 %v762_v40  ;;  %v2424_v49 = vpop.f32.mrf.mxu2  ;;  %v2426_v50 = vpop.f32.mrf.mxu3 }
  0xe4   : > { %1302 = vmatpush.msrb.mxu1 %v890_v41  ;;  %1328 = vmatpush.msrb.mxu2 %v763_v42 }
  0xe5   : > { %1354 = vmatpush.msrb.mxu3 %v891_v43  ;;  %1277 = vmatpush.msrb.mxu0 %v754_v44 }
  0xe6   : > { %1303 = vmatpush.msrb.mxu1 %v882_v45  ;;  %1329 = vmatpush.msrb.mxu2 %v755_v46 }
  0xe7   : > { %1355 = vmatpush.msrb.mxu3 %v883_v47  ;;  %1278 = vmatpush.msrb.mxu0 %v746_v48  ;;  %v2430_v57 = vpop.f32.mrf.mxu0  ;;  %v615_v62 = vpop.f32.mrf.mxu1 }
  0xe8   : > { %1304 = vmatpush.msrb.mxu1 %v874_v51  ;;  %1330 = vmatpush.msrb.mxu2 %v747_v52  ;;  %v2433_v1 = vadd.f32 %v615_v62, %v2428_v8  ;;  %v1372_v51 = vld [vmem:[#allocation8] sm:$0xff] }
  0xe9   : > { %1356 = vmatpush.msrb.mxu3 %v875_v53  ;;  %1279 = vmatpush.msrb.mxu0 %v738_v54  ;;  %v486_v54 = vadd.f32 %v2391_v58, %v2428_v8 }
  0xea   : > { %1305 = vmatpush.msrb.mxu1 %v866_v55  ;;  %1331 = vmatpush.msrb.mxu2 %v739_v56  ;;  %v1373_v56 = vld [vmem:[#allocation8 + $0x8] sm:$0xff] }
  0xeb   : > { %1357 = vmatpush.msrb.mxu3 %v867_v63  ;;  %1280 = vmatpush.msrb.mxu0 %v730_v0 }
  0xec   : > { %1306 = vmatpush.msrb.mxu1 %v858_v2  ;;  %1332 = vmatpush.msrb.mxu2 %v731_v3  ;;  %v2449_v31 = vpop.permute.xlu0 %450  ;;  %v676_v2 = vmax.f32 %v486_v54, 0.0 }
  0xed   : > { %1358 = vmatpush.msrb.mxu3 %v859_v4  ;;  %1281 = vmatpush.msrb.mxu0 %v722_v5 }
  0xee   : > { %1307 = vmatpush.msrb.mxu1 %v850_v6  ;;  %1333 = vmatpush.msrb.mxu2 %v723_v7  ;;  %v641_v22 = vpop.f32.mrf.mxu2  ;;  %v667_v23 = vpop.f32.mrf.mxu3 }
  0xef   : > { %1359 = vmatpush.msrb.mxu3 %v851_v9  ;;  %1282 = vmatpush.msrb.mxu0 %v714_v10  ;;  %v2436_v25 = vadd.f32 %v641_v22, %v2428_v8  ;;  %v2439_v26 = vadd.f32 %v667_v23, %v2428_v8  ;;  %v1381_v22 = vld [vmem:[#allocation8 + $0x48] sm:$0xff] }
  0xf0   : > { %1308 = vmatpush.msrb.mxu1 %v842_v13  ;;  %1334 = vmatpush.msrb.mxu2 %v715_v19 }
  0xf1   : > { %1360 = vmatpush.msrb.mxu3 %v843_v20  ;;  %1283 = vmatpush.msrb.mxu0 %v706_v21  ;;  %v2441_v28 = vpop.f32.mrf.mxu0  ;;  %v2443_v30 = vpop.f32.mrf.mxu1  ;;  %v1380_v21 = vld [vmem:[#allocation8 + $0x40] sm:$0xff] }
  0xf2   : > { %1309 = vmatpush.msrb.mxu1 %v834_v16  ;;  %1335 = vmatpush.msrb.mxu2 %v707_v24 }
  0xf3   : > { %1361 = vmatpush.msrb.mxu3 %v835_v27  ;;  %1284 = vmatmul.f32.vlgmr.msrb.gmra.mxu0 %v2341_v59 }
  0xf4   : > { %1310 = vmatmul.f32.vlgmr.msrb.gmra.mxu1 %v2344_v60  ;;  %1336 = vmatmul.f32.vlgmr.msrb.gmra.mxu2 %v2341_v59 }
  0xf5   : > { %1362 = vmatmul.f32.vlgmr.msrb.gmra.mxu3 %v2344_v60 }
  0xf7   : > { %v2458_v41 = vpop.permute.xlu1 %455 }
  0xf8   : > { %v644_v35 = vpop.f32.mrf.mxu2  ;;  %v670_v36 = vpop.f32.mrf.mxu3 }
  0xf9   : > { %v2452_v39 = vadd.f32 %v644_v35, %v2449_v31  ;;  %v2455_v40 = vadd.f32 %v670_v36, %v2449_v31  ;;  %v489_v35 = vadd.f32 %v2404_v17, %v2449_v31  ;;  %v515_v36 = vadd.f32 %v2406_v18, %v2449_v31  ;;  %v1389_v18 = vld [vmem:[#allocation8 + $0x88] sm:$0xff] }
  0xfb   : > { %1287 = vmatmul.f32.gmra.mxu0 %v2351_v14  ;;  %v595_v42 = vpop.f32.mrf.mxu0 }
  0xfc   : > { %1313 = vmatmul.f32.gmra.mxu1 %v2354_v15  ;;  %1339 = vmatmul.f32.gmra.mxu2 %v2351_v14  ;;  %v2463_v59 = vadd.f32 %v595_v42, %v2458_v41  ;;  %v621_v60 = vpop.f32.mrf.mxu1 }
  0xfd   : > { %1365 = vmatmul.f32.gmra.mxu3 %v2354_v15  ;;  %v2467_v43 = vadd.f32 %v621_v60, %v2458_v41 }
 0x102   : > { %v647_v44 = vpop.f32.mrf.mxu2 }
 0x103   : > { %1290 = vmatmul.f32.gmra.mxu0 %v2364_v33  ;;  %v2471_v45 = vadd.f32 %v647_v44, %v2458_v41  ;;  %v673_v46 = vpop.f32.mrf.mxu3 }
 0x104   : > { %1316 = vmatmul.f32.gmra.mxu1 %v2367_v34  ;;  %1342 = vmatmul.f32.gmra.mxu2 %v2364_v33  ;;  %v2476_v14 = vadd.f32 %v673_v46, %v2458_v41 }
 0x105   : > { %1368 = vmatmul.f32.gmra.mxu3 %v2367_v34  ;;  %v512_v34 = vadd.f32 %v2393_v61, %v2428_v8 }
 0x106   : > { %v973_v15 = vpop.f32.mrf.mxu0 }
 0x107   : > { %v999_v47 = vpop.f32.mrf.mxu1  ;;  %v677_v58 = vmax.f32 %v512_v34, 0.0  ;;  %v1374_v34 = vld [vmem:[#allocation8 + $0x10] sm:$0xff] }
 0x108   : > { %v1000_v48 = vadd.f32 %v999_v47, %v973_v15  ;;  %v684_v47 = vmax.f32 %v489_v35, 0.0 }
 0x10a   : > { %v1396_v52 = vmul.f32 %v1372_v51, %v1000_v48  ;;  %v685_v51 = vmax.f32 %v515_v36, 0.0 }
 0x10d   : > { %v1025_v53 = vpop.f32.mrf.mxu2 }
 0x10e   : > { %v1051_v55 = vpop.f32.mrf.mxu3 }
 0x10f   : > { %v2482_v62 = vpop.permute.xlu1 %1425  ;;  %v1052_v33 = vadd.f32 %v1051_v55, %v1025_v53 }
 0x110   : > { %v1438_v63 = vadd.f32 %v2482_v62, %v1396_v52  ;;  %v976_v5 = vpop.f32.mrf.mxu0 }
 0x111   : > { %v1397_v0 = vmul.f32 %v1373_v56, %v1052_v33  ;;  %v1002_v6 = vpop.f32.mrf.mxu1  ;;  %v1388_v56 = vld [vmem:[#allocation8 + $0x80] sm:$0xff] }
 0x112   : > { %v1462_v3 = vmax.f32 %v1438_v63, 0.0  ;;  %v1003_v61 = vadd.f32 %v1002_v6, %v976_v5  ;;  %v492_v6 = vadd.f32 %v2416_v37, %v2458_v41 }
 0x113   : > { %v1439_v4 = vadd.f32 %v2482_v62, %v1397_v0 }
 0x114   : > { %v1486_v7 = vadd.f32 %v1462_v3, %v676_v2  ;;  %v1404_v24 = vmul.f32 %v1380_v21, %v1003_v61  ;;  %v1375_v21 = vld [vmem:[#allocation8 + $0x18] sm:$0xff] }
 0x115   : > { %v1463_v9 = vmax.f32 %v1439_v4, 0.0  ;;  %v538_v4 = vadd.f32 %v2400_v11, %v2428_v8 }
 0x116   : > { %1510 = vst [vmem:[%s2488_s26] sm:$0xff] %v1486_v7  ;;  %v518_v7 = vadd.f32 %v2418_v38, %v2458_v41 }
 0x117   : > { %v1487_v10 = vadd.f32 %v1463_v9, %v677_v58  ;;  %v1028_v13 = vpop.f32.mrf.mxu2 }
 0x118   : > { %v1054_v19 = vpop.f32.mrf.mxu3 }
 0x119   : > { %1511 = vst [vmem:[%s2488_s26 + $0x8] sm:$0xff] %v1487_v10  ;;  %v1055_v20 = vadd.f32 %v1054_v19, %v1028_v13  ;;  %v678_v19 = vmax.f32 %v538_v4, 0.0 }
 0x11b   : > { %v979_v23 = vpop.f32.mrf.mxu0  ;;  %v1005_v16 = vpop.f32.mrf.mxu1  ;;  %v1405_v27 = vmul.f32 %v1381_v22, %v1055_v20  ;;  %v692_v22 = vmax.f32 %v492_v6, 0.0 }
 0x11c   : > { %v1006_v17 = vadd.f32 %v1005_v16, %v979_v23  ;;  %v693_v16 = vmax.f32 %v518_v7, 0.0 }
 0x11e   : > { %v1412_v2 = vmul.f32 %v1388_v56, %v1006_v17 }
 0x121   : > { %v2496_v42 = vpop.permute.xlu2 %1430 }
 0x122   : > { %v1446_v60 = vadd.f32 %v2496_v42, %v1404_v24  ;;  %v1447_v44 = vadd.f32 %v2496_v42, %v1405_v27  ;;  %v1031_v46 = vpop.f32.mrf.mxu2  ;;  %v1057_v15 = vpop.f32.mrf.mxu3  ;;  %v564_v27 = vadd.f32 %v2402_v12, %v2428_v8 }
 0x123   : > { %v1058_v55 = vadd.f32 %v1057_v15, %v1031_v46 }
 0x124   : > { %v1470_v48 = vmax.f32 %v1446_v60, 0.0  ;;  %v1471_v52 = vmax.f32 %v1447_v44, 0.0  ;;  %v1382_v44 = vld [vmem:[#allocation8 + $0x50] sm:$0xff] }
 0x125   : > { %v1413_v3 = vmul.f32 %v1389_v18, %v1058_v55 }
 0x126   : > { %v1494_v53 = vadd.f32 %v1470_v48, %v684_v47  ;;  %v1495_v54 = vadd.f32 %v1471_v52, %v685_v51  ;;  %v541_v51 = vadd.f32 %v2412_v29, %v2449_v31 }
 0x127   : > { %v1077_v33 = vpop.f32.mrf.mxu0  ;;  %v1103_v63 = vpop.f32.mrf.mxu1 }
 0x128   : > { %1518 = vst [vmem:[%s2488_s26 + $0x40] sm:$0xff] %v1494_v53  ;;  %v1104_v0 = vadd.f32 %v1103_v63, %v1077_v33  ;;  %v679_v53 = vmax.f32 %v564_v27, 0.0  ;;  %v686_v55 = vmax.f32 %v541_v51, 0.0  ;;  %v1383_v63 = vld [vmem:[#allocation8 + $0x58] sm:$0xff] }
 0x129   : > { %1519 = vst [vmem:[%s2488_s26 + $0x48] sm:$0xff] %v1495_v54 }
 0x12a   : > { %v1398_v5 = vmul.f32 %v1374_v34, %v1104_v0 }
 0x12c   : > { %v1440_v58 = vadd.f32 %v2482_v62, %v1398_v5  ;;  %v1390_v5 = vld [vmem:[#allocation8 + $0x90] sm:$0xff] }
 0x12d   : > { %v2509_v9 = vpop.permute.xlu2 %1435 }
 0x12e   : > { %v1454_v10 = vadd.f32 %v2509_v9, %v1412_v2  ;;  %v1455_v13 = vadd.f32 %v2509_v9, %v1413_v3  ;;  %v1464_v61 = vmax.f32 %v1440_v58, 0.0  ;;  %v1129_v20 = vpop.f32.mrf.mxu2  ;;  %v1155_v11 = vpop.f32.mrf.mxu3  ;;  %v567_v2 = vadd.f32 %v2414_v32, %v2449_v31 }
 0x12f   : > { %v1156_v37 = vadd.f32 %v1155_v11, %v1129_v20  ;;  %v544_v58 = vadd.f32 %v2424_v49, %v2458_v41 }
 0x130   : > { %v1478_v23 = vmax.f32 %v1454_v10, 0.0  ;;  %v1479_v38 = vmax.f32 %v1455_v13, 0.0  ;;  %v1488_v24 = vadd.f32 %v1464_v61, %v678_v19  ;;  %v687_v13 = vmax.f32 %v567_v2, 0.0 }
 0x131   : > { %v1399_v35 = vmul.f32 %v1375_v21, %v1156_v37  ;;  %v1080_v36 = vpop.f32.mrf.mxu0  ;;  %v1106_v60 = vpop.f32.mrf.mxu1  ;;  %v694_v32 = vmax.f32 %v544_v58, 0.0  ;;  %v1391_v37 = vld [vmem:[#allocation8 + $0x98] sm:$0xff]  ;;  %v1385_v58 = vld [vmem:[#allocation8 + $0x68] sm:$0xff] }
 0x132   : > { %v1502_v46 = vadd.f32 %v1478_v23, %v692_v22  ;;  %v1503_v15 = vadd.f32 %v1479_v38, %v693_v16  ;;  %1512 = vst [vmem:[%s2488_s26 + $0x10] sm:$0xff] %v1488_v24  ;;  %v1107_v47 = vadd.f32 %v1106_v60, %v1080_v36  ;;  %v570_v38 = vadd.f32 %v2426_v50, %v2458_v41 }
 0x133   : > { %v1441_v48 = vadd.f32 %v2482_v62, %v1399_v35 }
 0x134   : > { %1526 = vst [vmem:[%s2488_s26 + $0x80] sm:$0xff] %v1502_v46  ;;  %v1406_v52 = vmul.f32 %v1382_v44, %v1107_v47  ;;  %v695_v27 = vmax.f32 %v570_v38, 0.0  ;;  %v1376_v44 = vld [vmem:[#allocation8 + $0x20] sm:$0xff]  ;;  %v590_v47 = vadd.f32 %v2430_v57, %v2428_v8  ;;  %v681_v57 = vmax.f32 %v2433_v1, 0.0 }
 0x135   : > { %1527 = vst [vmem:[%s2488_s26 + $0x88] sm:$0xff] %v1503_v15  ;;  %v1465_v54 = vmax.f32 %v1441_v48, 0.0  ;;  %v619_v1 = vadd.f32 %v2443_v30, %v2449_v31 }
 0x136   : > { %v1448_v12 = vadd.f32 %v2496_v42, %v1406_v52  ;;  %v680_v50 = vmax.f32 %v590_v47, 0.0 }
 0x137   : > { %v1489_v17 = vadd.f32 %v1465_v54, %v679_v53  ;;  %v1377_v54 = vld [vmem:[#allocation8 + $0x28] sm:$0xff] }
 0x138   : > { %v1472_v56 = vmax.f32 %v1448_v12, 0.0  ;;  %v1132_v18 = vpop.f32.mrf.mxu2  ;;  %v1158_v33 = vpop.f32.mrf.mxu3 }
 0x139   : > { %1513 = vst [vmem:[%s2488_s26 + $0x18] sm:$0xff] %v1489_v17  ;;  %v1159_v34 = vadd.f32 %v1158_v33, %v1132_v18  ;;  %v1384_v33 = vld [vmem:[#allocation8 + $0x60] sm:$0xff] }
 0x13a   : > { %v1496_v0 = vadd.f32 %v1472_v56, %v686_v55 }
 0x13b   : > { %v1407_v29 = vmul.f32 %v1383_v63, %v1159_v34  ;;  %v1083_v3 = vpop.f32.mrf.mxu0  ;;  %v1109_v4 = vpop.f32.mrf.mxu1  ;;  %v593_v34 = vadd.f32 %v2441_v28, %v2449_v31 }
 0x13c   : > { %1520 = vst [vmem:[%s2488_s26 + $0x50] sm:$0xff] %v1496_v0  ;;  %v1110_v6 = vadd.f32 %v1109_v4, %v1083_v3 }
 0x13d   : > { %v1449_v7 = vadd.f32 %v2496_v42, %v1407_v29 }
 0x13e   : > { %v1414_v10 = vmul.f32 %v1390_v5, %v1110_v6  ;;  %v688_v5 = vmax.f32 %v593_v34, 0.0 }
 0x13f   : > { %v1473_v19 = vmax.f32 %v1449_v7, 0.0 }
 0x140   : > { %v1456_v61 = vadd.f32 %v2509_v9, %v1414_v10 }
 0x141   : > { %v1497_v20 = vadd.f32 %v1473_v19, %v687_v13 }
 0x142   : > { %v1480_v11 = vmax.f32 %v1456_v61, 0.0  ;;  %v1135_v21 = vpop.f32.mrf.mxu2  ;;  %v1161_v22 = vpop.f32.mrf.mxu3 }
 0x143   : > { %1521 = vst [vmem:[%s2488_s26 + $0x58] sm:$0xff] %v1497_v20  ;;  %v1162_v23 = vadd.f32 %v1161_v22, %v1135_v21  ;;  %v1392_v20 = vld [vmem:[#allocation8 + $0xa0] sm:$0xff]  ;;  %v689_v22 = vmax.f32 %v619_v1, 0.0 }
 0x144   : > { %v1504_v16 = vadd.f32 %v1480_v11, %v694_v32 }
 0x145   : > { %v1415_v49 = vmul.f32 %v1391_v37, %v1162_v23 }
 0x146   : > { %1528 = vst [vmem:[%s2488_s26 + $0x90] sm:$0xff] %v1504_v16 }
 0x147   : > { %v1457_v24 = vadd.f32 %v2509_v9, %v1415_v49  ;;  %v696_v49 = vmax.f32 %v2463_v59, 0.0 }
 0x149   : > { %v1481_v35 = vmax.f32 %v1457_v24, 0.0  ;;  %v1393_v24 = vld [vmem:[#allocation8 + $0xa8] sm:$0xff] }
 0x14a   : > { %v1181_v36 = vpop.f32.mrf.mxu0  ;;  %v1207_v60 = vpop.f32.mrf.mxu1 }
 0x14b   : > { %v1505_v46 = vadd.f32 %v1481_v35, %v695_v27  ;;  %v1208_v15 = vadd.f32 %v1207_v60, %v1181_v36 }
 0x14d   : > { %1529 = vst [vmem:[%s2488_s26 + $0x98] sm:$0xff] %v1505_v46  ;;  %v1400_v48 = vmul.f32 %v1376_v44, %v1208_v15  ;;  %v697_v44 = vmax.f32 %v2467_v43, 0.0 }
 0x14f   : > { %v1442_v51 = vadd.f32 %v2482_v62, %v1400_v48 }
 0x151   : > { %v1466_v41 = vmax.f32 %v1442_v51, 0.0  ;;  %v1233_v52 = vpop.f32.mrf.mxu2  ;;  %v1259_v53 = vpop.f32.mrf.mxu3  ;;  %v1378_v51 = vld [vmem:[#allocation8 + $0x30] sm:$0xff] }
 0x152   : > { %v1260_v12 = vadd.f32 %v1259_v53, %v1233_v52  ;;  %v682_v53 = vmax.f32 %v2436_v25, 0.0 }
 0x153   : > { %v1490_v17 = vadd.f32 %v1466_v41, %v680_v50 }
 0x154   : > { %v1401_v55 = vmul.f32 %v1377_v54, %v1260_v12  ;;  %v1184_v56 = vpop.f32.mrf.mxu0 }
 0x155   : > { %1514 = vst [vmem:[%s2488_s26 + $0x20] sm:$0xff] %v1490_v17  ;;  %v1210_v18 = vpop.f32.mrf.mxu1  ;;  %v1379_v17 = vld [vmem:[#allocation8 + $0x38] sm:$0xff] }
 0x156   : > { %v1443_v63 = vadd.f32 %v2482_v62, %v1401_v55  ;;  %v1211_v8 = vadd.f32 %v1210_v18, %v1184_v56  ;;  %v1386_v18 = vld [vmem:[#allocation8 + $0x70] sm:$0xff] }
 0x158   : > { %v1467_v0 = vmax.f32 %v1443_v63, 0.0  ;;  %v1408_v2 = vmul.f32 %v1384_v33, %v1211_v8 }
 0x15a   : > { %v1491_v29 = vadd.f32 %v1467_v0, %v681_v57  ;;  %v1450_v3 = vadd.f32 %v2496_v42, %v1408_v2  ;;  %v683_v2 = vmax.f32 %v2439_v26, 0.0 }
 0x15b   : > { %v1236_v4 = vpop.f32.mrf.mxu2 }
 0x15c   : > { %1515 = vst [vmem:[%s2488_s26 + $0x28] sm:$0xff] %v1491_v29  ;;  %v1474_v6 = vmax.f32 %v1450_v3, 0.0  ;;  %v1262_v7 = vpop.f32.mrf.mxu3  ;;  %v690_v3 = vmax.f32 %v2452_v39, 0.0 }
 0x15d   : > { %v1263_v10 = vadd.f32 %v1262_v7, %v1236_v4 }
 0x15e   : > { %v1498_v13 = vadd.f32 %v1474_v6, %v688_v5  ;;  %v1187_v19 = vpop.f32.mrf.mxu0  ;;  %v1387_v6 = vld [vmem:[#allocation8 + $0x78] sm:$0xff] }
 0x15f   : > { %v1409_v61 = vmul.f32 %v1385_v58, %v1263_v10  ;;  %v1213_v28 = vpop.f32.mrf.mxu1 }
 0x160   : > { %1522 = vst [vmem:[%s2488_s26 + $0x60] sm:$0xff] %v1498_v13  ;;  %v1214_v32 = vadd.f32 %v1213_v28, %v1187_v19  ;;  %v1394_v19 = vld [vmem:[#allocation8 + $0xb0] sm:$0xff] }
 0x161   : > { %v1451_v11 = vadd.f32 %v2496_v42, %v1409_v61 }
 0x162   : > { %v1416_v21 = vmul.f32 %v1392_v20, %v1214_v32  ;;  %v691_v20 = vmax.f32 %v2455_v40, 0.0 }
 0x163   : > { %v1475_v37 = vmax.f32 %v1451_v11, 0.0 }
 0x164   : > { %v1458_v23 = vadd.f32 %v2509_v9, %v1416_v21  ;;  %v698_v21 = vmax.f32 %v2471_v45, 0.0  ;;  %v699_v45 = vmax.f32 %v2476_v14, 0.0 }
 0x165   : > { %v1499_v16 = vadd.f32 %v1475_v37, %v689_v22  ;;  %v1239_v38 = vpop.f32.mrf.mxu2 }
 0x166   : > { %v1482_v30 = vmax.f32 %v1458_v23, 0.0  ;;  %v1265_v31 = vpop.f32.mrf.mxu3  ;;  %v1395_v23 = vld [vmem:[#allocation8 + $0xb8] sm:$0xff] }
 0x167   : > { %1523 = vst [vmem:[%s2488_s26 + $0x68] sm:$0xff] %v1499_v16  ;;  %v1266_v27 = vadd.f32 %v1265_v31, %v1239_v38 }
 0x168   : > { %v1506_v35 = vadd.f32 %v1482_v30, %v696_v49 }
 0x169   : > { %v1417_v36 = vmul.f32 %v1393_v24, %v1266_v27 }
 0x16a   : > { %1530 = vst [vmem:[%s2488_s26 + $0xa0] sm:$0xff] %v1506_v35 }
 0x16b   : > { %v1459_v60 = vadd.f32 %v2509_v9, %v1417_v36 }
 0x16d   : > { %v1483_v46 = vmax.f32 %v1459_v60, 0.0 }
 0x16f   : > { %v1507_v15 = vadd.f32 %v1483_v46, %v697_v44 }
 0x170   : > { %v1285_v47 = vpop.f32.mrf.mxu0 }
 0x171   : > { %1531 = vst [vmem:[%s2488_s26 + $0xa8] sm:$0xff] %v1507_v15  ;;  %v1311_v48 = vpop.f32.mrf.mxu1 }
 0x172   : > { %v1312_v59 = vadd.f32 %v1311_v48, %v1285_v47 }
 0x174   : > { %v1402_v50 = vmul.f32 %v1378_v51, %v1312_v59 }
 0x176   : > { %v1444_v41 = vadd.f32 %v2482_v62, %v1402_v50 }
 0x177   : > { %v1337_v52 = vpop.f32.mrf.mxu2 }
 0x178   : > { %v1468_v54 = vmax.f32 %v1444_v41, 0.0  ;;  %v1363_v12 = vpop.f32.mrf.mxu3  ;;  %v1288_v55 = vpop.f32.mrf.mxu0 }
 0x179   : > { %v1364_v56 = vadd.f32 %v1363_v12, %v1337_v52  ;;  %v1314_v43 = vpop.f32.mrf.mxu1 }
 0x17a   : > { %v1492_v33 = vadd.f32 %v1468_v54, %v682_v53  ;;  %v1315_v63 = vadd.f32 %v1314_v43, %v1288_v55 }
 0x17b   : > { %v1403_v8 = vmul.f32 %v1379_v17, %v1364_v56 }
 0x17c   : > { %1516 = vst [vmem:[%s2488_s26 + $0x30] sm:$0xff] %v1492_v33  ;;  %v1410_v57 = vmul.f32 %v1386_v18, %v1315_v63 }
 0x17d   : > { %v1445_v34 = vadd.f32 %v2482_v62, %v1403_v8 }
 0x17e   : > { %v1452_v0 = vadd.f32 %v2496_v42, %v1410_v57 }
 0x17f   : > { %v1469_v25 = vmax.f32 %v1445_v34, 0.0  ;;  %v1340_v29 = vpop.f32.mrf.mxu2 }
 0x180   : > { %v1476_v4 = vmax.f32 %v1452_v0, 0.0  ;;  %v1366_v5 = vpop.f32.mrf.mxu3  ;;  %v1291_v7 = vpop.f32.mrf.mxu0 }
 0x181   : > { %v1493_v58 = vadd.f32 %v1469_v25, %v683_v2  ;;  %v1367_v10 = vadd.f32 %v1366_v5, %v1340_v29  ;;  %v1317_v13 = vpop.f32.mrf.mxu1 }
 0x182   : > { %v1500_v62 = vadd.f32 %v1476_v4, %v690_v3  ;;  %v1318_v1 = vadd.f32 %v1317_v13, %v1291_v7 }
 0x183   : > { %1517 = vst [vmem:[%s2488_s26 + $0x38] sm:$0xff] %v1493_v58  ;;  %v1411_v61 = vmul.f32 %v1387_v6, %v1367_v10 }
 0x184   : > { %1524 = vst [vmem:[%s2488_s26 + $0x70] sm:$0xff] %v1500_v62  ;;  %v1418_v26 = vmul.f32 %v1394_v19, %v1318_v1 }
 0x185   : > { %v1453_v28 = vadd.f32 %v2496_v42, %v1411_v61 }
 0x186   : > { %v1460_v39 = vadd.f32 %v2509_v9, %v1418_v26 }
 0x187   : > { %v1477_v32 = vmax.f32 %v1453_v28, 0.0  ;;  %v1343_v11 = vpop.f32.mrf.mxu2 }
 0x188   : > { %v1484_v22 = vmax.f32 %v1460_v39, 0.0  ;;  %v1369_v37 = vpop.f32.mrf.mxu3 }
 0x189   : > { %v1501_v16 = vadd.f32 %v1477_v32, %v691_v20  ;;  %v1370_v38 = vadd.f32 %v1369_v37, %v1343_v11 }
 0x18a   : > { %v1508_v49 = vadd.f32 %v1484_v22, %v698_v21 }
 0x18b   : > { %1525 = vst [vmem:[%s2488_s26 + $0x78] sm:$0xff] %v1501_v16  ;;  %v1419_v42 = vmul.f32 %v1395_v23, %v1370_v38 }
 0x18c   : > { %1532 = vst [vmem:[%s2488_s26 + $0xb0] sm:$0xff] %v1508_v49 }
 0x18d   : > { %v1461_v40 = vadd.f32 %v2509_v9, %v1419_v42 }
 0x18f   : > { %v1485_v30 = vmax.f32 %v1461_v40, 0.0 }
 0x191   : > { %v1509_v31 = vadd.f32 %v1485_v30, %v699_v45 }
 0x193   : > { %1533 = vst [vmem:[%s2488_s26 + $0xb8] sm:$0xff] %v1509_v31 }
 0x194   : > { %1976 = shalt.err (!%p1973_p0)
}
 0x195   : > { %s2052_s5 = smov 1024   ;;  %s2053_s10 = smov 64  }
 0x196   : > { %1743 = dma.vmem_to_hbm [thread:$0]  (%p2175_p7), %s1550_s18, 3072, %s1552_s23, %s1535_s13, %s2052_s5, %s2052_s5, %s2053_s10  }
 0x197 PF: > { %s2651_s8 = sld [smem:[#allocation16_spill]]  ;;  %p1760_p3 = pnand %p1689_p11, %p2139_p6 }
 0x199   : > { %p1761_p5 = pneg %p1760_p3 }
 0x19d   : > { %s1566_s7 = sand.u32 1, %s2651_s8  }
 0x19e   : > { %s1567_s24 = scalar_lea.sflag [#allocation4], %s1566_s7 }
 0x19f   : > { %2018 = dma.done.wait (%p1761_p5), %s1567_s24, 3072  }
 0x1a0   : > { %2020 = vsyncadd (%p1761_p5), %s1567_s24, 4294964224  ;;  %s27_s29 = sadd.s32 1, %s2043_s29   ;;  %s2653_s26 = sld [smem:[#allocation17_spill]] }
 0x1a1   : > { %p24_p9 = scmp.ge.s32.totalorder %s27_s29, 4   ;;  %s2654_s14 = sld [smem:[#allocation21_spill]] }
 0x1a2   : > { %s2655_s30 = sld [smem:[#allocation19_spill]]  ;;  %s2656_s24 = smov %s2027_s25 }
 0x1a3   : > { %s2659_s27 = smov %s2039_s28 }
 0x1a4   :  { %26 = sbr.rel (!%p24_p9) target bundleno = 13 (0xd), region = 114 }
 0x1a6   : > { %s2657_s25 = smov %s2653_s26 }
 0x1a7   : > { %s2658_s26 = smov %s2654_s14 }
 0x1a8   : > { %s2660_s28 = smov %s2655_s30 }
 0x1a9   :  { %1573 = vsyncpa [#allocation3], 1 }
 0x1aa   :  { %1575 = vsyncpa [#allocation3 + $0x1], 1 }
 0x1ab   :  { %1576 = vsyncpa [#allocation6], 1 }
 0x1ac   :  { %1578 = vsyncpa [#allocation6 + $0x1], 1 }
 0x1ad   :  { %1579 = vsyncpa [#allocation9], 1 }
 0x1ae   :  { %1580 = vsyncpa [#allocation4], 1 }
 0x1af   :  { %1582 = vsyncpa [#allocation4 + $0x1], 1 }

</bundles_post_ra>
